<compile_context>
chip_gen: v7x
topology: tpu7x:2x2x1
jax: 0.10.0
libtpu: 0.0.40
codegen_flags: <defaults>
</compile_context>

<pallas_src>
from functools import partial

import jax
import jax.numpy as jnp
from jax.experimental import pallas as pl
from jax.experimental.pallas import tpu as pltpu

EPS = 1e-5
_LANE = 128
_SMALL_CIN = 8                       # transfer conv uses the VPU below this
_VMEM_TARGET = 40 * 1024 * 1024      # buffer budget used for tile planning
_VMEM_LIMIT_CAP = 56 * 1024 * 1024   # stay under v7x's 64 MiB physical VMEM/TC


# ------------------------- host-side BN folding ----------------------------- #
def fold_conv_bn(w, b, gamma, beta, rmean, rvar, eps=EPS):
    """Fold inference-mode BatchNorm1d into a preceding 1x1 Conv1d, in f32.

    w: [Cout, Cin]; b/gamma/beta/rmean/rvar: [Cout].  Returns (w_f32, b_f32).
    """
    scale = (gamma / jnp.sqrt(rvar + eps)).astype(jnp.float32)
    w_f = w.astype(jnp.float32) * scale[:, None]
    b_f = (scale * (b.astype(jnp.float32) - rmean) + beta).astype(jnp.float32)
    return w_f, b_f


def prepare_params(transfer_raw, block_raws, cin):
    """Fold BN (f32), cast MXU weights to bf16, pack all biases into one array."""
    folded_w, folded_b, couts = [], [], []
    wt, bt = fold_conv_bn(*transfer_raw)
    vpu_transfer = cin <= _SMALL_CIN
    folded_w.append(wt if vpu_transfer else wt.astype(jnp.bfloat16))
    folded_b.append(bt)
    couts.append(wt.shape[0])
    for net1_raw, net2_raw in block_raws:
        for raw in (net1_raw, net2_raw):
            w, b = fold_conv_bn(*raw)
            folded_w.append(w.astype(jnp.bfloat16))   # bf16 MXU operands
            folded_b.append(b)
            couts.append(w.shape[0])
    cmax = max(couts)
    bpack = jnp.zeros((cmax, len(folded_b)), jnp.float32)
    for i, b in enumerate(folded_b):
        bpack = bpack.at[: couts[i], i].set(b)
    return folded_w, bpack, tuple(couts), vpu_transfer


# ------------------------------ fused kernel -------------------------------- #
def _global_extraction_kernel(num_blocks, couts, vpu_transfer,
                              x_ref, bpack_ref, *refs):
    """Fused transfer + residual blocks for one (batch-block, N-tile).

    refs = (W_transfer, [W_net1, W_net2] * num_blocks, out_ref).
    Weights have BN folded in (bf16, except a small-Cin f32 transfer weight);
    biases are packed column-wise in bpack_ref ([Cmax, num_convs], f32).
    """
    o_ref = refs[-1]
    w_refs = refs[:-1]
    bb_rows = x_ref.shape[0]

    def bias(i):
        # [couts[i], 1] column; broadcasts over lanes at the add site.
        return bpack_ref[: couts[i], i:i + 1]

    def conv_mxu(w_ref, b, inp):
        # bf16 x bf16 -> f32 accumulation on the MXU; bias add in f32.
        return jnp.dot(w_ref[...], inp.astype(jnp.bfloat16),
                       preferred_element_type=jnp.float32) + b

    for bb in range(bb_rows):
        x = x_ref[bb]                                        # [Cin, TN] f32

        # transfer: Conv1d + BN + ReLU
        if vpu_transfer:
            # Cin is tiny: Cin broadcast-FMAs on the VPU beat an MXU pass.
            w = w_refs[0][...]                               # [Cout, Cin] f32
            h = bias(0)
            for c in range(x.shape[0]):
                h = h + w[:, c:c + 1] * x[c:c + 1, :]
        else:
            h = conv_mxu(w_refs[0], bias(0), x)
        h = jnp.maximum(h, 0.0)                              # [Cout, TN] f32

        for blk in range(num_blocks):
            # net1: Conv1d + BN + ReLU
            t = jnp.maximum(conv_mxu(w_refs[1 + 2 * blk],
                                     bias(1 + 2 * blk), h), 0.0)
            # net2: Conv1d + BN, residual add + ReLU
            h = jnp.maximum(conv_mxu(w_refs[2 + 2 * blk],
                                     bias(2 + 2 * blk), t) + h, 0.0)

        o_ref[bb] = h.astype(o_ref.dtype)


# ----------------------------- tiling planner -------------------------------- #
def _plan_tiling(batch, cin, cout, n_pad, const_bytes):
    """Pick (batch-block, N-tile) under the VMEM budget."""
    def buf_bytes(bb, tn):
        x_t = bb * cin * tn * 4 * 2         # f32 input tile, double-buffered
        o_t = bb * cout * tn * 4 * 2        # f32 output tile, double-buffered
        act = 3 * bb * cout * tn * 4        # live intermediates (h, t, tmp)
        return x_t + o_t + act + 2 * const_bytes

    # Largest multiple-of-128 divisor of n_pad (<= 2048) that fits the budget.
    tn = _LANE
    cand = 2 * _LANE
    while cand <= min(n_pad, 2048):
        if n_pad % cand == 0 and buf_bytes(1, cand) <= _VMEM_TARGET:
            tn = cand
        cand += _LANE
    n_tiles = n_pad // tn

    # Batch blocking: fewer, bigger grid steps, but keep >= 2 steps total so
    # both v7x TensorCores stay busy.
    min_steps = 2 if batch * n_tiles >= 2 else 1
    bb = 1
    for c in range(batch, 0, -1):
        if (batch % c == 0 and buf_bytes(c, tn) <= _VMEM_TARGET
                and (batch // c) * n_tiles >= min_steps):
            bb = c
            break
    return bb, tn, buf_bytes(bb, tn)


def _const_spec(shape, single_buffer):
    rank = len(shape)
    if single_buffer:
        # Constant index map -> data never changes; one buffer, one DMA.
        return pl.BlockSpec(shape, lambda b, n: (0,) * rank,
                            pipeline_mode=pl.Buffered(1))
    return pl.BlockSpec(shape, lambda b, n: (0,) * rank)


# ------------------------------ host wrapper --------------------------------- #
def global_extraction_pallas(x, weights, bias_pack, couts, num_blocks,
                             vpu_transfer, out_dtype=jnp.float32):
    """x: [B, Cin, N] channel-first.  Returns [B, Cout, N] in out_dtype."""
    B, Cin, N = x.shape
    Cout = couts[-1]

    # Lane-dense output: pad N up to a multiple of 128, slice it back after.
    n_pad = ((N + _LANE - 1) // _LANE) * _LANE
    if n_pad != N:
        x = jnp.pad(x, ((0, 0), (0, 0), (0, n_pad - N)))

    const_bytes = bias_pack.size * bias_pack.dtype.itemsize
    for w in weights:
        const_bytes += w.size * w.dtype.itemsize
    bb, tn, required = _plan_tiling(B, Cin, Cout, n_pad, const_bytes)
    grid = (B // bb, n_pad // tn)
    vmem_limit = int(min(_VMEM_LIMIT_CAP,
                         max(32 * 1024 * 1024, 2 * required)))

    def build(single_buffer_consts):
        in_specs = [pl.BlockSpec((bb, Cin, tn), lambda b, n: (b, 0, n)),
                    _const_spec(bias_pack.shape, single_buffer_consts)]
        in_specs += [_const_spec(w.shape, single_buffer_consts)
                     for w in weights]
        return pl.pallas_call(
            partial(_global_extraction_kernel, num_blocks, tuple(couts),
                    vpu_transfer),
            out_shape=jax.ShapeDtypeStruct((B, Cout, n_pad), out_dtype),
            grid=grid,
            in_specs=in_specs,
            out_specs=pl.BlockSpec((bb, Cout, tn), lambda b, n: (b, 0, n)),
            compiler_params=pltpu.CompilerParams(
                dimension_semantics=("parallel", "parallel"),
                vmem_limit_bytes=vmem_limit),
        )

    try:
        out = build(True)(x, bias_pack, *weights)
    except Exception:
        # TODO(synk): pl.Buffered(1) single-buffering of constants is not
        # supported by this jax/libtpu combo; fall back to default buffering.
        out = build(False)(x, bias_pack, *weights)

    return out[:, :, :N] if n_pad != N else out


# --------------------------- pure-JAX reference ------------------------------ #
def _conv_bn_ref(x, w, b, gamma, beta, rmean, rvar, eps=EPS):
    y = jnp.einsum("oi,bin->bon", w, x) + b[None, :, None]
    y = (y - rmean[None, :, None]) / jnp.sqrt(rvar[None, :, None] + eps)
    return gamma[None, :, None] * y + beta[None, :, None]


def global_extraction_reference(x, transfer_raw, block_raws):
    h = jax.nn.relu(_conv_bn_ref(x, *transfer_raw))
    for (net1_raw, net2_raw) in block_raws:
        t = jax.nn.relu(_conv_bn_ref(h, *net1_raw))
        h = jax.nn.relu(_conv_bn_ref(t, *net2_raw) + h)
    return h


# --------------------------------- demo -------------------------------------- #
def _make_conv_bn_params(key, cin, cout):
    k1, k2, k3, k4, k5, k6 = jax.random.split(key, 6)
    bound = 1.0 / jnp.sqrt(cin)
    w = jax.random.uniform(k1, (cout, cin), jnp.float32, -bound, bound)
    b = jax.random.uniform(k2, (cout,), jnp.float32, -bound, bound)
    gamma = 1.0 + 0.1 * jax.random.normal(k3, (cout,), jnp.float32)
    beta = 0.1 * jax.random.normal(k4, (cout,), jnp.float32)
    rmean = 0.1 * jax.random.normal(k5, (cout,), jnp.float32)
    rvar = jax.random.uniform(k6, (cout,), jnp.float32, 0.5, 1.5)
    return (w, b, gamma, beta, rmean, rvar)


if __name__ == "__main__":
    B, Cin, Cout, N = 2, 4, 32, 16       # batch, in_channels, out_channels, N
    BLOCKS = 2                           # GlobalExtraction default
    RES_EXPANSION = 1                    # hidden width = int(Cout * 1)

    key = jax.random.PRNGKey(0)
    key, kx = jax.random.split(key)
    x = jax.random.normal(kx, (B, Cin, N), dtype=jnp.float32)

    # Raw (unfolded) parameters, PyTorch-like init.
    key, kt = jax.random.split(key)
    transfer_raw = _make_conv_bn_params(kt, Cin, Cout)

    hidden = int(Cout * RES_EXPANSION)
    block_raws = []
    for _ in range(BLOCKS):
        key, k1, k2 = jax.random.split(key, 3)
        block_raws.append((_make_conv_bn_params(k1, Cout, hidden),
                           _make_conv_bn_params(k2, hidden, Cout)))

    weights, bias_pack, couts, vpu_transfer = prepare_params(
        transfer_raw, block_raws, Cin)

    out = global_extraction_pallas(x, weights, bias_pack, couts, BLOCKS,
                                   vpu_transfer)
    out = jax.block_until_ready(out)

    ref = global_extraction_reference(x, transfer_raw, block_raws)
    assert out.shape == (B, Cout, N), out.shape
    max_err = float(jnp.max(jnp.abs(out - ref)))
    # bf16 MXU operands (f32 accumulation): loosen tolerance vs the f32 ref.
    assert jnp.allclose(out, ref, atol=5e-2, rtol=5e-2), max_err
    print("KERNEL_OK")
</pallas_src>

<mosaic_0001>
module attributes {stable_mosaic.version = 11 : i64} {
  func.func @_global_extraction_kernel(%arg0: i32, %arg1: i32, %arg2: memref<1x4x128xf32, #tpu.memory_space<vmem>>, %arg3: memref<32x5xf32, #tpu.memory_space<vmem>>, %arg4: memref<32x4xf32, #tpu.memory_space<vmem>>, %arg5: memref<32x32xbf16, #tpu.memory_space<vmem>>, %arg6: memref<32x32xbf16, #tpu.memory_space<vmem>>, %arg7: memref<32x32xbf16, #tpu.memory_space<vmem>>, %arg8: memref<32x32xbf16, #tpu.memory_space<vmem>>, %arg9: memref<1x32x128xf32, #tpu.memory_space<vmem>>) attributes {dimension_semantics = [#tpu.dimension_semantics<parallel>, #tpu.dimension_semantics<parallel>], iteration_bounds = array<i64: 2, 1>, scalar_prefetch = 0 : i64, scratch_operands = 0 : i64, tpu.core_type = #tpu.core_type<tc>, window_params = [{transform_indices = @transform_0, window_bounds = array<i64: 1, 4, 128>}, {pipeline_mode = #tpu.pipeline_mode<synchronous>, transform_indices = @transform_1, window_bounds = array<i64: 32, 5>}, {pipeline_mode = #tpu.pipeline_mode<synchronous>, transform_indices = @transform_2, window_bounds = array<i64: 32, 4>}, {pipeline_mode = #tpu.pipeline_mode<synchronous>, transform_indices = @transform_3, window_bounds = array<i64: 32, 32>}, {pipeline_mode = #tpu.pipeline_mode<synchronous>, transform_indices = @transform_4, window_bounds = array<i64: 32, 32>}, {pipeline_mode = #tpu.pipeline_mode<synchronous>, transform_indices = @transform_5, window_bounds = array<i64: 32, 32>}, {pipeline_mode = #tpu.pipeline_mode<synchronous>, transform_indices = @transform_6, window_bounds = array<i64: 32, 32>}, {transform_indices = @transform_7, window_bounds = array<i64: 1, 32, 128>}]} {
    %c0 = arith.constant 0 : index
    %c0_0 = arith.constant 0 : index
    %c0_1 = arith.constant 0 : index
    %0 = vector.load %arg2[%c0, %c0_0, %c0_1] : memref<1x4x128xf32, #tpu.memory_space<vmem>>, vector<1x4x128xf32>
    %1 = vector.shape_cast %0 : vector<1x4x128xf32> to vector<4x128xf32>
    %c0_2 = arith.constant 0 : index
    %c0_3 = arith.constant 0 : index
    %2 = vector.load %arg4[%c0_2, %c0_3] : memref<32x4xf32, #tpu.memory_space<vmem>>, vector<32x4xf32>
    %c0_4 = arith.constant 0 : index
    %c0_5 = arith.constant 0 : index
    %3 = vector.load %arg3[%c0_4, %c0_5] : memref<32x5xf32, #tpu.memory_space<vmem>>, vector<32x1xf32>
    %4 = vector.extract_strided_slice %2 {offsets = [0, 0], sizes = [32, 1], strides = [1, 1]} : vector<32x4xf32> to vector<32x1xf32>
    %5 = vector.extract_strided_slice %1 {offsets = [0, 0], sizes = [1, 128], strides = [1, 1]} : vector<4x128xf32> to vector<1x128xf32>
    %6 = vector.broadcast %4 : vector<32x1xf32> to vector<32x128xf32>
    %7 = vector.broadcast %5 : vector<1x128xf32> to vector<32x128xf32>
    %8 = arith.mulf %6, %7 : vector<32x128xf32>
    %9 = vector.broadcast %3 : vector<32x1xf32> to vector<32x128xf32>
    %10 = arith.addf %9, %8 : vector<32x128xf32>
    %11 = vector.extract_strided_slice %2 {offsets = [0, 1], sizes = [32, 1], strides = [1, 1]} : vector<32x4xf32> to vector<32x1xf32>
    %12 = vector.extract_strided_slice %1 {offsets = [1, 0], sizes = [1, 128], strides = [1, 1]} : vector<4x128xf32> to vector<1x128xf32>
    %13 = vector.broadcast %11 : vector<32x1xf32> to vector<32x128xf32>
    %14 = vector.broadcast %12 : vector<1x128xf32> to vector<32x128xf32>
    %15 = arith.mulf %13, %14 : vector<32x128xf32>
    %16 = arith.addf %10, %15 : vector<32x128xf32>
    %17 = vector.extract_strided_slice %2 {offsets = [0, 2], sizes = [32, 1], strides = [1, 1]} : vector<32x4xf32> to vector<32x1xf32>
    %18 = vector.extract_strided_slice %1 {offsets = [2, 0], sizes = [1, 128], strides = [1, 1]} : vector<4x128xf32> to vector<1x128xf32>
    %19 = vector.broadcast %17 : vector<32x1xf32> to vector<32x128xf32>
    %20 = vector.broadcast %18 : vector<1x128xf32> to vector<32x128xf32>
    %21 = arith.mulf %19, %20 : vector<32x128xf32>
    %22 = arith.addf %16, %21 : vector<32x128xf32>
    %23 = vector.extract_strided_slice %2 {offsets = [0, 3], sizes = [32, 1], strides = [1, 1]} : vector<32x4xf32> to vector<32x1xf32>
    %24 = vector.extract_strided_slice %1 {offsets = [3, 0], sizes = [1, 128], strides = [1, 1]} : vector<4x128xf32> to vector<1x128xf32>
    %25 = vector.broadcast %23 : vector<32x1xf32> to vector<32x128xf32>
    %26 = vector.broadcast %24 : vector<1x128xf32> to vector<32x128xf32>
    %27 = arith.mulf %25, %26 : vector<32x128xf32>
    %28 = arith.addf %22, %27 : vector<32x128xf32>
    %cst = arith.constant 0.000000e+00 : f32
    %29 = vector.broadcast %cst : f32 to vector<32x128xf32>
    %30 = arith.maximumf %28, %29 : vector<32x128xf32>
    %c0_6 = arith.constant 0 : index
    %c1 = arith.constant 1 : index
    %31 = vector.load %arg3[%c0_6, %c1] : memref<32x5xf32, #tpu.memory_space<vmem>>, vector<32x1xf32>
    %c0_7 = arith.constant 0 : index
    %c0_8 = arith.constant 0 : index
    %32 = vector.load %arg5[%c0_7, %c0_8] : memref<32x32xbf16, #tpu.memory_space<vmem>>, vector<32x32xbf16>
    %33 = arith.truncf %30 : vector<32x128xf32> to vector<32x128xbf16>
    %cst_9 = arith.constant dense<0.000000e+00> : vector<32x128xf32>
    %34 = tpu.matmul %32, %33, %cst_9 {dimension_numbers = #tpu.dot_dimension_numbers<[1], [0], [0], [1], [0, 0, 1, 1], [], []>} : vector<32x32xbf16>, vector<32x128xbf16>, vector<32x128xf32> -> vector<32x128xf32>
    %35 = vector.broadcast %31 : vector<32x1xf32> to vector<32x128xf32>
    %36 = arith.addf %34, %35 : vector<32x128xf32>
    %cst_10 = arith.constant 0.000000e+00 : f32
    %37 = vector.broadcast %cst_10 : f32 to vector<32x128xf32>
    %38 = arith.maximumf %36, %37 : vector<32x128xf32>
    %c0_11 = arith.constant 0 : index
    %c2 = arith.constant 2 : index
    %39 = vector.load %arg3[%c0_11, %c2] : memref<32x5xf32, #tpu.memory_space<vmem>>, vector<32x1xf32>
    %c0_12 = arith.constant 0 : index
    %c0_13 = arith.constant 0 : index
    %40 = vector.load %arg6[%c0_12, %c0_13] : memref<32x32xbf16, #tpu.memory_space<vmem>>, vector<32x32xbf16>
    %41 = arith.truncf %38 : vector<32x128xf32> to vector<32x128xbf16>
    %cst_14 = arith.constant dense<0.000000e+00> : vector<32x128xf32>
    %42 = tpu.matmul %40, %41, %cst_14 {dimension_numbers = #tpu.dot_dimension_numbers<[1], [0], [0], [1], [0, 0, 1, 1], [], []>} : vector<32x32xbf16>, vector<32x128xbf16>, vector<32x128xf32> -> vector<32x128xf32>
    %43 = vector.broadcast %39 : vector<32x1xf32> to vector<32x128xf32>
    %44 = arith.addf %42, %43 : vector<32x128xf32>
    %45 = arith.addf %44, %30 : vector<32x128xf32>
    %cst_15 = arith.constant 0.000000e+00 : f32
    %46 = vector.broadcast %cst_15 : f32 to vector<32x128xf32>
    %47 = arith.maximumf %45, %46 : vector<32x128xf32>
    %c0_16 = arith.constant 0 : index
    %c3 = arith.constant 3 : index
    %48 = vector.load %arg3[%c0_16, %c3] : memref<32x5xf32, #tpu.memory_space<vmem>>, vector<32x1xf32>
    %c0_17 = arith.constant 0 : index
    %c0_18 = arith.constant 0 : index
    %49 = vector.load %arg7[%c0_17, %c0_18] : memref<32x32xbf16, #tpu.memory_space<vmem>>, vector<32x32xbf16>
    %50 = arith.truncf %47 : vector<32x128xf32> to vector<32x128xbf16>
    %cst_19 = arith.constant dense<0.000000e+00> : vector<32x128xf32>
    %51 = tpu.matmul %49, %50, %cst_19 {dimension_numbers = #tpu.dot_dimension_numbers<[1], [0], [0], [1], [0, 0, 1, 1], [], []>} : vector<32x32xbf16>, vector<32x128xbf16>, vector<32x128xf32> -> vector<32x128xf32>
    %52 = vector.broadcast %48 : vector<32x1xf32> to vector<32x128xf32>
    %53 = arith.addf %51, %52 : vector<32x128xf32>
    %cst_20 = arith.constant 0.000000e+00 : f32
    %54 = vector.broadcast %cst_20 : f32 to vector<32x128xf32>
    %55 = arith.maximumf %53, %54 : vector<32x128xf32>
    %c0_21 = arith.constant 0 : index
    %c4 = arith.constant 4 : index
    %56 = vector.load %arg3[%c0_21, %c4] : memref<32x5xf32, #tpu.memory_space<vmem>>, vector<32x1xf32>
    %c0_22 = arith.constant 0 : index
    %c0_23 = arith.constant 0 : index
    %57 = vector.load %arg8[%c0_22, %c0_23] : memref<32x32xbf16, #tpu.memory_space<vmem>>, vector<32x32xbf16>
    %58 = arith.truncf %55 : vector<32x128xf32> to vector<32x128xbf16>
    %cst_24 = arith.constant dense<0.000000e+00> : vector<32x128xf32>
    %59 = tpu.matmul %57, %58, %cst_24 {dimension_numbers = #tpu.dot_dimension_numbers<[1], [0], [0], [1], [0, 0, 1, 1], [], []>} : vector<32x32xbf16>, vector<32x128xbf16>, vector<32x128xf32> -> vector<32x128xf32>
    %60 = vector.broadcast %56 : vector<32x1xf32> to vector<32x128xf32>
    %61 = arith.addf %59, %60 : vector<32x128xf32>
    %62 = arith.addf %61, %47 : vector<32x128xf32>
    %cst_25 = arith.constant 0.000000e+00 : f32
    %63 = vector.broadcast %cst_25 : f32 to vector<32x128xf32>
    %64 = arith.maximumf %62, %63 : vector<32x128xf32>
    %c0_26 = arith.constant 0 : index
    %c0_27 = arith.constant 0 : index
    %c0_28 = arith.constant 0 : index
    %65 = vector.load %arg9[%c0_26, %c0_27, %c0_28] : memref<1x32x128xf32, #tpu.memory_space<vmem>>, vector<1x32x128xf32>
    %66 = vector.shape_cast %65 : vector<1x32x128xf32> to vector<32x128xf32>
    %67 = vector.shape_cast %64 : vector<32x128xf32> to vector<1x32x128xf32>
    tpu.vector_store %arg9[%c0_26, %c0_27, %c0_28], %67 {strides = array<i32>} : memref<1x32x128xf32, #tpu.memory_space<vmem>>, vector<1x32x128xf32>,
    return
  }
  func.func @transform_0(%arg0: i32, %arg1: i32) -> (i32, i32, i32) {
    %c0_i32 = arith.constant 0 : i32
    %c0_i32_0 = arith.constant 0 : i32
    return %arg0, %c0_i32, %arg1 : i32, i32, i32
  }
  func.func @transform_1(%arg0: i32, %arg1: i32) -> (i32, i32) {
    %c0_i32 = arith.constant 0 : i32
    %c0_i32_0 = arith.constant 0 : i32
    %c0_i32_1 = arith.constant 0 : i32
    return %c0_i32, %c0_i32_0 : i32, i32
  }
  func.func @transform_2(%arg0: i32, %arg1: i32) -> (i32, i32) {
    %c0_i32 = arith.constant 0 : i32
    %c0_i32_0 = arith.constant 0 : i32
    %c0_i32_1 = arith.constant 0 : i32
    return %c0_i32, %c0_i32_0 : i32, i32
  }
  func.func @transform_3(%arg0: i32, %arg1: i32) -> (i32, i32) {
    %c0_i32 = arith.constant 0 : i32
    %c0_i32_0 = arith.constant 0 : i32
    %c0_i32_1 = arith.constant 0 : i32
    return %c0_i32, %c0_i32_0 : i32, i32
  }
  func.func @transform_4(%arg0: i32, %arg1: i32) -> (i32, i32) {
    %c0_i32 = arith.constant 0 : i32
    %c0_i32_0 = arith.constant 0 : i32
    %c0_i32_1 = arith.constant 0 : i32
    return %c0_i32, %c0_i32_0 : i32, i32
  }
  func.func @transform_5(%arg0: i32, %arg1: i32) -> (i32, i32) {
    %c0_i32 = arith.constant 0 : i32
    %c0_i32_0 = arith.constant 0 : i32
    %c0_i32_1 = arith.constant 0 : i32
    return %c0_i32, %c0_i32_0 : i32, i32
  }
  func.func @transform_6(%arg0: i32, %arg1: i32) -> (i32, i32) {
    %c0_i32 = arith.constant 0 : i32
    %c0_i32_0 = arith.constant 0 : i32
    %c0_i32_1 = arith.constant 0 : i32
    return %c0_i32, %c0_i32_0 : i32, i32
  }
  func.func @transform_7(%arg0: i32, %arg1: i32) -> (i32, i32, i32) {
    %c0_i32 = arith.constant 0 : i32
    %c0_i32_0 = arith.constant 0 : i32
    return %arg0, %c0_i32, %arg1 : i32, i32, i32
  }
}

module attributes {stable_mosaic.version = 11 : i64} {
  func.func @_global_extraction_kernel(%arg0: i32, %arg1: i32, %arg2: memref<1x4x128xf32, #tpu.memory_space<vmem>>, %arg3: memref<32x5xf32, #tpu.memory_space<vmem>>, %arg4: memref<32x4xf32, #tpu.memory_space<vmem>>, %arg5: memref<32x32xbf16, #tpu.memory_space<vmem>>, %arg6: memref<32x32xbf16, #tpu.memory_space<vmem>>, %arg7: memref<32x32xbf16, #tpu.memory_space<vmem>>, %arg8: memref<32x32xbf16, #tpu.memory_space<vmem>>, %arg9: memref<1x32x128xf32, #tpu.memory_space<vmem>>) attributes {dimension_semantics = [#tpu.dimension_semantics<parallel>, #tpu.dimension_semantics<parallel>], iteration_bounds = array<i64: 2, 1>, scalar_prefetch = 0 : i64, scratch_operands = 0 : i64, tpu.core_type = #tpu.core_type<tc>, window_params = [{transform_indices = @transform_0, window_bounds = array<i64: 1, 4, 128>}, {pipeline_mode = #tpu.pipeline_mode<synchronous>, transform_indices = @transform_1, window_bounds = array<i64: 32, 5>}, {pipeline_mode = #tpu.pipeline_mode<synchronous>, transform_indices = @transform_2, window_bounds = array<i64: 32, 4>}, {pipeline_mode = #tpu.pipeline_mode<synchronous>, transform_indices = @transform_3, window_bounds = array<i64: 32, 32>}, {pipeline_mode = #tpu.pipeline_mode<synchronous>, transform_indices = @transform_4, window_bounds = array<i64: 32, 32>}, {pipeline_mode = #tpu.pipeline_mode<synchronous>, transform_indices = @transform_5, window_bounds = array<i64: 32, 32>}, {pipeline_mode = #tpu.pipeline_mode<synchronous>, transform_indices = @transform_6, window_bounds = array<i64: 32, 32>}, {transform_indices = @transform_7, window_bounds = array<i64: 1, 32, 128>}]} {
    %c0 = arith.constant 0 : index
    %c0_0 = arith.constant 0 : index
    %c0_1 = arith.constant 0 : index
    %0 = vector.load %arg2[%c0, %c0_0, %c0_1] : memref<1x4x128xf32, #tpu.memory_space<vmem>>, vector<1x4x128xf32>
    %1 = vector.shape_cast %0 : vector<1x4x128xf32> to vector<4x128xf32>
    %c0_2 = arith.constant 0 : index
    %c0_3 = arith.constant 0 : index
    %2 = vector.load %arg4[%c0_2, %c0_3] : memref<32x4xf32, #tpu.memory_space<vmem>>, vector<32x4xf32>
    %c0_4 = arith.constant 0 : index
    %c0_5 = arith.constant 0 : index
    %3 = vector.load %arg3[%c0_4, %c0_5] : memref<32x5xf32, #tpu.memory_space<vmem>>, vector<32x1xf32>
    %4 = vector.extract_strided_slice %2 {offsets = [0, 0], sizes = [32, 1], strides = [1, 1]} : vector<32x4xf32> to vector<32x1xf32>
    %5 = vector.extract_strided_slice %1 {offsets = [0, 0], sizes = [1, 128], strides = [1, 1]} : vector<4x128xf32> to vector<1x128xf32>
    %6 = vector.broadcast %4 : vector<32x1xf32> to vector<32x128xf32>
    %7 = vector.broadcast %5 : vector<1x128xf32> to vector<32x128xf32>
    %8 = arith.mulf %6, %7 : vector<32x128xf32>
    %9 = vector.broadcast %3 : vector<32x1xf32> to vector<32x128xf32>
    %10 = arith.addf %9, %8 : vector<32x128xf32>
    %11 = vector.extract_strided_slice %2 {offsets = [0, 1], sizes = [32, 1], strides = [1, 1]} : vector<32x4xf32> to vector<32x1xf32>
    %12 = vector.extract_strided_slice %1 {offsets = [1, 0], sizes = [1, 128], strides = [1, 1]} : vector<4x128xf32> to vector<1x128xf32>
    %13 = vector.broadcast %11 : vector<32x1xf32> to vector<32x128xf32>
    %14 = vector.broadcast %12 : vector<1x128xf32> to vector<32x128xf32>
    %15 = arith.mulf %13, %14 : vector<32x128xf32>
    %16 = arith.addf %10, %15 : vector<32x128xf32>
    %17 = vector.extract_strided_slice %2 {offsets = [0, 2], sizes = [32, 1], strides = [1, 1]} : vector<32x4xf32> to vector<32x1xf32>
    %18 = vector.extract_strided_slice %1 {offsets = [2, 0], sizes = [1, 128], strides = [1, 1]} : vector<4x128xf32> to vector<1x128xf32>
    %19 = vector.broadcast %17 : vector<32x1xf32> to vector<32x128xf32>
    %20 = vector.broadcast %18 : vector<1x128xf32> to vector<32x128xf32>
    %21 = arith.mulf %19, %20 : vector<32x128xf32>
    %22 = arith.addf %16, %21 : vector<32x128xf32>
    %23 = vector.extract_strided_slice %2 {offsets = [0, 3], sizes = [32, 1], strides = [1, 1]} : vector<32x4xf32> to vector<32x1xf32>
    %24 = vector.extract_strided_slice %1 {offsets = [3, 0], sizes = [1, 128], strides = [1, 1]} : vector<4x128xf32> to vector<1x128xf32>
    %25 = vector.broadcast %23 : vector<32x1xf32> to vector<32x128xf32>
    %26 = vector.broadcast %24 : vector<1x128xf32> to vector<32x128xf32>
    %27 = arith.mulf %25, %26 : vector<32x128xf32>
    %28 = arith.addf %22, %27 : vector<32x128xf32>
    %cst = arith.constant 0.000000e+00 : f32
    %29 = vector.broadcast %cst : f32 to vector<32x128xf32>
    %30 = arith.maximumf %28, %29 : vector<32x128xf32>
    %c0_6 = arith.constant 0 : index
    %c1 = arith.constant 1 : index
    %31 = vector.load %arg3[%c0_6, %c1] : memref<32x5xf32, #tpu.memory_space<vmem>>, vector<32x1xf32>
    %c0_7 = arith.constant 0 : index
    %c0_8 = arith.constant 0 : index
    %32 = vector.load %arg5[%c0_7, %c0_8] : memref<32x32xbf16, #tpu.memory_space<vmem>>, vector<32x32xbf16>
    %33 = arith.truncf %30 : vector<32x128xf32> to vector<32x128xbf16>
    %cst_9 = arith.constant dense<0.000000e+00> : vector<32x128xf32>
    %34 = tpu.matmul %32, %33, %cst_9 {dimension_numbers = #tpu.dot_dimension_numbers<[1], [0], [0], [1], [0, 0, 1, 1], [], []>} : vector<32x32xbf16>, vector<32x128xbf16>, vector<32x128xf32> -> vector<32x128xf32>
    %35 = vector.broadcast %31 : vector<32x1xf32> to vector<32x128xf32>
    %36 = arith.addf %34, %35 : vector<32x128xf32>
    %cst_10 = arith.constant 0.000000e+00 : f32
    %37 = vector.broadcast %cst_10 : f32 to vector<32x128xf32>
    %38 = arith.maximumf %36, %37 : vector<32x128xf32>
    %c0_11 = arith.constant 0 : index
    %c2 = arith.constant 2 : index
    %39 = vector.load %arg3[%c0_11, %c2] : memref<32x5xf32, #tpu.memory_space<vmem>>, vector<32x1xf32>
    %c0_12 = arith.constant 0 : index
    %c0_13 = arith.constant 0 : index
    %40 = vector.load %arg6[%c0_12, %c0_13] : memref<32x32xbf16, #tpu.memory_space<vmem>>, vector<32x32xbf16>
    %41 = arith.truncf %38 : vector<32x128xf32> to vector<32x128xbf16>
    %cst_14 = arith.constant dense<0.000000e+00> : vector<32x128xf32>
    %42 = tpu.matmul %40, %41, %cst_14 {dimension_numbers = #tpu.dot_dimension_numbers<[1], [0], [0], [1], [0, 0, 1, 1], [], []>} : vector<32x32xbf16>, vector<32x128xbf16>, vector<32x128xf32> -> vector<32x128xf32>
    %43 = vector.broadcast %39 : vector<32x1xf32> to vector<32x128xf32>
    %44 = arith.addf %42, %43 : vector<32x128xf32>
    %45 = arith.addf %44, %30 : vector<32x128xf32>
    %cst_15 = arith.constant 0.000000e+00 : f32
    %46 = vector.broadcast %cst_15 : f32 to vector<32x128xf32>
    %47 = arith.maximumf %45, %46 : vector<32x128xf32>
    %c0_16 = arith.constant 0 : index
    %c3 = arith.constant 3 : index
    %48 = vector.load %arg3[%c0_16, %c3] : memref<32x5xf32, #tpu.memory_space<vmem>>, vector<32x1xf32>
    %c0_17 = arith.constant 0 : index
    %c0_18 = arith.constant 0 : index
    %49 = vector.load %arg7[%c0_17, %c0_18] : memref<32x32xbf16, #tpu.memory_space<vmem>>, vector<32x32xbf16>
    %50 = arith.truncf %47 : vector<32x128xf32> to vector<32x128xbf16>
    %cst_19 = arith.constant dense<0.000000e+00> : vector<32x128xf32>
    %51 = tpu.matmul %49, %50, %cst_19 {dimension_numbers = #tpu.dot_dimension_numbers<[1], [0], [0], [1], [0, 0, 1, 1], [], []>} : vector<32x32xbf16>, vector<32x128xbf16>, vector<32x128xf32> -> vector<32x128xf32>
    %52 = vector.broadcast %48 : vector<32x1xf32> to vector<32x128xf32>
    %53 = arith.addf %51, %52 : vector<32x128xf32>
    %cst_20 = arith.constant 0.000000e+00 : f32
    %54 = vector.broadcast %cst_20 : f32 to vector<32x128xf32>
    %55 = arith.maximumf %53, %54 : vector<32x128xf32>
    %c0_21 = arith.constant 0 : index
    %c4 = arith.constant 4 : index
    %56 = vector.load %arg3[%c0_21, %c4] : memref<32x5xf32, #tpu.memory_space<vmem>>, vector<32x1xf32>
    %c0_22 = arith.constant 0 : index
    %c0_23 = arith.constant 0 : index
    %57 = vector.load %arg8[%c0_22, %c0_23] : memref<32x32xbf16, #tpu.memory_space<vmem>>, vector<32x32xbf16>
    %58 = arith.truncf %55 : vector<32x128xf32> to vector<32x128xbf16>
    %cst_24 = arith.constant dense<0.000000e+00> : vector<32x128xf32>
    %59 = tpu.matmul %57, %58, %cst_24 {dimension_numbers = #tpu.dot_dimension_numbers<[1], [0], [0], [1], [0, 0, 1, 1], [], []>} : vector<32x32xbf16>, vector<32x128xbf16>, vector<32x128xf32> -> vector<32x128xf32>
    %60 = vector.broadcast %56 : vector<32x1xf32> to vector<32x128xf32>
    %61 = arith.addf %59, %60 : vector<32x128xf32>
    %62 = arith.addf %61, %47 : vector<32x128xf32>
    %cst_25 = arith.constant 0.000000e+00 : f32
    %63 = vector.broadcast %cst_25 : f32 to vector<32x128xf32>
    %64 = arith.maximumf %62, %63 : vector<32x128xf32>
    %c0_26 = arith.constant 0 : index
    %c0_27 = arith.constant 0 : index
    %c0_28 = arith.constant 0 : index
    %65 = vector.load %arg9[%c0_26, %c0_27, %c0_28] : memref<1x32x128xf32, #tpu.memory_space<vmem>>, vector<1x32x128xf32>
    %66 = vector.shape_cast %65 : vector<1x32x128xf32> to vector<32x128xf32>
    %67 = vector.shape_cast %64 : vector<32x128xf32> to vector<1x32x128xf32>
    tpu.vector_store %arg9[%c0_26, %c0_27, %c0_28], %67 {strides = array<i32>} : memref<1x32x128xf32, #tpu.memory_space<vmem>>, vector<1x32x128xf32>,
    return
  }
  func.func @transform_0(%arg0: i32, %arg1: i32) -> (i32, i32, i32) {
    %c0_i32 = arith.constant 0 : i32
    %c0_i32_0 = arith.constant 0 : i32
    return %arg0, %c0_i32, %arg1 : i32, i32, i32
  }
  func.func @transform_1(%arg0: i32, %arg1: i32) -> (i32, i32) {
    %c0_i32 = arith.constant 0 : i32
    %c0_i32_0 = arith.constant 0 : i32
    %c0_i32_1 = arith.constant 0 : i32
    return %c0_i32, %c0_i32_0 : i32, i32
  }
  func.func @transform_2(%arg0: i32, %arg1: i32) -> (i32, i32) {
    %c0_i32 = arith.constant 0 : i32
    %c0_i32_0 = arith.constant 0 : i32
    %c0_i32_1 = arith.constant 0 : i32
    return %c0_i32, %c0_i32_0 : i32, i32
  }
  func.func @transform_3(%arg0: i32, %arg1: i32) -> (i32, i32) {
    %c0_i32 = arith.constant 0 : i32
    %c0_i32_0 = arith.constant 0 : i32
    %c0_i32_1 = arith.constant 0 : i32
    return %c0_i32, %c0_i32_0 : i32, i32
  }
  func.func @transform_4(%arg0: i32, %arg1: i32) -> (i32, i32) {
    %c0_i32 = arith.constant 0 : i32
    %c0_i32_0 = arith.constant 0 : i32
    %c0_i32_1 = arith.constant 0 : i32
    return %c0_i32, %c0_i32_0 : i32, i32
  }
  func.func @transform_5(%arg0: i32, %arg1: i32) -> (i32, i32) {
    %c0_i32 = arith.constant 0 : i32
    %c0_i32_0 = arith.constant 0 : i32
    %c0_i32_1 = arith.constant 0 : i32
    return %c0_i32, %c0_i32_0 : i32, i32
  }
  func.func @transform_6(%arg0: i32, %arg1: i32) -> (i32, i32) {
    %c0_i32 = arith.constant 0 : i32
    %c0_i32_0 = arith.constant 0 : i32
    %c0_i32_1 = arith.constant 0 : i32
    return %c0_i32, %c0_i32_0 : i32, i32
  }
  func.func @transform_7(%arg0: i32, %arg1: i32) -> (i32, i32, i32) {
    %c0_i32 = arith.constant 0 : i32
    %c0_i32_0 = arith.constant 0 : i32
    return %arg0, %c0_i32, %arg1 : i32, i32, i32
  }
}

</mosaic_0001>

<bundles_post_ra>
// kernel: tpu_custom_call.1
= control target key start
LH: loop header
LB: loop body
LE: loop exit
PB: predicated region body
PF: predicated region fallthrough
CT: control target
= control target key end

     0   :  { %12 = vsyncpa [#allocation3], 0  ;;  %s1441_s0 = inlined_call_operand.vmem [shape: f32[2,4,128], index: 0, kind: input, shape index: {}]   ;;  %s1442_s1 = inlined_call_operand.vmem [shape: f32[32,5], index: 1, kind: input, shape index: {}]   ;;  %s1443_s2 = inlined_call_operand.vmem [shape: f32[32,4], index: 2, kind: input, shape index: {}]   ;;  %s1444_s3 = inlined_call_operand.vmem [shape: bf16[32,32], index: 3, kind: input, shape index: {}]   ;;  %s1445_s4 = inlined_call_operand.vmem [shape: bf16[32,32], index: 4, kind: input, shape index: {}]   ;;  %s1446_s5 = inlined_call_operand.vmem [shape: bf16[32,32], index: 5, kind: input, shape index: {}]   ;;  %s1447_s6 = inlined_call_operand.vmem [shape: bf16[32,32], index: 6, kind: input, shape index: {}]   ;;  %s1448_s7 = inlined_call_operand.hbm [shape: f32[2,32,128], index: 7, kind: output, shape index: {}]  }
   0x1   :  { %14 = vsyncpa [#allocation3 + $0x1], 0  ;;  %s1211_s24 = smov 0   ;;  %s1213_s25 = smov 0  }
   0x2   :  { %s1215_s26 = smov 0   ;;  %s1217_s27 = smov 0  }
   0x3   :  { %s1219_s28 = smov 0   ;;  %s1221_s29 = smov 0  }
   0x4 LB: > { %s916_s30 = sadd.s32 4294967295, %s1161_s29   ;;  %s917_s8 = sadd.s32 4294967294, %s1161_s29   ;;  %s1161_s29 = sphi %s1221_s29, %s20_s29   ;;  %s1157_s28 = sphi %s1219_s28, %s1455_s28   ;;  %s1153_s27 = sphi %s1217_s27, %s1454_s27   ;;  %s1149_s26 = sphi %s1215_s26, %s1453_s26   ;;  %s1145_s25 = sphi %s1213_s25, %s1452_s25   ;;  %s1141_s24 = sphi %s1211_s24, %s1451_s24  }
   0x5   : > { %s32_s9 = sadd.s32 1, %s1157_s28  ;;  %s195_s10 = sadd.s32 1, %s1149_s26 }
   0x6   : > { %p34_p0 = scmp.ge.s32.totalorder %s32_s9, 2  ;;  %p205_p1 = scmp.ne.s32.totalorder %s1149_s26, %s1145_s25 }
   0x7   : > { %p206_p2 = scmp.eq.s32.totalorder %s916_s30, 1  ;;  %p211_p3 = scmp.ne.s32.totalorder %s1145_s25, %s1141_s24 }
   0x8   : > { %s1457_s9 = smov (%p34_p0, %s32_s9), 0  ;;  %p212_p5 = scmp.eq.s32.totalorder %s917_s8, 1 }
   0x9   : > { %p1251_p4 = por %p206_p2, %p205_p1  ;;  %s190_s12 = ssub.s32 %s1157_s28, %s1457_s9 }
   0xa   : > { %p920_p6 = scmp.ge.s32.totalorder %s1161_s29, 1  ;;  %p193_p7 = scmp.eq.s32.totalorder %s190_s12, 0 }
   0xb   : > { %p1258_p8 = por %p212_p5, %p211_p3  ;;  %p258_p9 = scmp.lt.s32.totalorder %s1161_s29, 3 }
   0xc   : > { %s1264_s14 = scalar_select %p193_p7, %s1149_s26, %s195_s10  }
   0xd   : > { %p259_p10 = pnand %p920_p6, %p258_p9 }
   0xe   : > { %v1269_v0 = vld [vmem:[%s1442_s1] sm:$0xff] (!%p259_p10)  ;;  %v1163_v2 = vmov (!%p259_p10), 0   ;;  %v1278_v3 = vld [vmem:[%s1442_s1 + $0x8] sm:$0xff] (!%p259_p10)  ;;  %v304_v5 = vld [vmem:[%s1443_s2 + $0x18] sm:$0xff] (!%p259_p10)  ;;  %v1164_v6 = vmov (!%p259_p10), 1   ;;  %v1165_v9 = vmov (!%p259_p10), 2   ;;  %v329_v19 = vlaneseq (!%p259_p10) }
   0xf   : > { %262 = sbr.rel (%p259_p10) target bundleno = 1133 (0x46d), region = 48  ;;  %v301_v1 = vld [vmem:[%s1443_s2] sm:$0xff] (!%p259_p10)  ;;  %1056 = vset.pattern.permute.xlu1 (!%p259_p10), %v1163_v2  ;;  %1055 = vset.pattern.permute.xlu0 (!%p259_p10), %v1163_v2  ;;  %v302_v4 = vld [vmem:[%s1443_s2 + $0x8] sm:$0xff] (!%p259_p10)  ;;  %v1290_v7 = vld [vmem:[%s1442_s1 + $0x10] sm:$0xff] (!%p259_p10)  ;;  %v1166_v10 = vmov (!%p259_p10), 3   ;;  %vm481_vm0 = vcmask (!%p259_p10), 261120  }
  0x10   : > { %339 = vperm.xlu1 (!%p259_p10), %1056, %v1269_v0   ;;  %311 = vperm.xlu0 (!%p259_p10), %1055, %v301_v1   ;;  %v303_v8 = vld [vmem:[%s1443_s2 + $0x10] sm:$0xff] (!%p259_p10)  ;;  %v1299_v11 = vld [vmem:[%s1442_s1 + $0x18] sm:$0xff] (!%p259_p10)  ;;  %v1075_v12 = vld [vmem:[%s1444_s3] sm:$0xff] (!%p259_p10)   ;;  %p292_p11 = scmp.lt.s32.totalorder (!%p259_p10), %s1153_s27, 1  ;;  %v330_v22 = vshrl.u32 (!%p259_p10), %v329_v19, 7  ;;  %s289_s10 = sand.u32 (!%p259_p10), 1, %s1145_s25  }
  0x11   : > { %965 = vmatprep.mubr.msk.bf16.mxu0 (!%p259_p10), %vm481_vm0, %v1075_v12  ;;  %s921_s12 = sshll.u32 (!%p259_p10), %s289_s10, 5  ;;  %s944_s17 = sshll.u32 (!%p259_p10), %s1153_s27, 9 }
  0x12   : > { %v331_v25 = vsub.s32 (!%p259_p10), 0, %v330_v22  ;;  %v379_v26 = vsub.s32 (!%p259_p10), 1, %v330_v22  ;;  %v407_v31 = vsub.s32 (!%p259_p10), 2, %v330_v22  ;;  %v435_v34 = vsub.s32 (!%p259_p10), 3, %v330_v22  ;;  %s291_s15 = scalar_lea.vmem (!%p259_p10), [#allocation2], %s921_s12  ;;  %s1168_s22 = smov (!%p259_p10), [#allocation2]  }
  0x13   : > { %s841_s16 = sshll.u32 (!%p259_p10), %s291_s15, 4  ;;  %s1087_s23 = sshll.u32 (!%p259_p10), %s1168_s22, 4  ;;  %s1388_s16 = int_to_ptr.vmem [resolvable:$true] %s841_s16  ;;  %s1088_s23 = int_to_ptr.vmem [resolvable:$false] %s1087_s23 }
  0x14   : > { %344 = vperm.xlu1 (!%p259_p10), %1056, %v1278_v3   ;;  %316 = vperm.xlu0 (!%p259_p10), %1055, %v302_v4   ;;  %p1090_p1 = scmp.lt.s32.totalorder (!%p259_p10), %s1388_s16, %s1088_s23 }
  0x16   : > { %s293_s20 = scalar_select %p292_p11, %s1153_s27, 1 }
  0x17   : > { %s1393_s27 = scalar_lea.hbm %s1448_s7, %s944_s17 }
  0x18   : > { %1057 = vset.pattern.permute.xlu1 %v1164_v6  ;;  %326 = vperm.xlu0 %1055, %v304_v5   ;;  %s922_s21 = sshll.u32 %s293_s20, 2  ;;  %s1395_s20 = scalar_lea.sflag [#allocation3], %s289_s10 }
  0x19   : > { %366 = vperm.xlu1 %1057, %v302_v4   ;;  %s298_s30 = scalar_lea.vmem %s1441_s0, %s922_s21  ;;  %s1083_s21 = scalar_lea.vmem %s1388_s16, 512 }
  0x1a   : > { %v300_v27 = vld [vmem:[%s298_s30] sm:$0xf]  ;;  %p1084_p12 = scmp.ne.s32.totalorder %s1388_s16, %s1083_s21  ;;  %s1089_s30 = scalar_lea.vmem %s1088_s23, 1024 }
  0x1b   : > { %v332_v29 = vrot.slane %v300_v27, %v331_v25  ;;  %v380_v30 = vrot.slane %v300_v27, %v379_v26  ;;  %v408_v38 = vrot.slane %v300_v27, %v407_v31  ;;  %v436_v42 = vrot.slane %v300_v27, %v435_v34  ;;  %p1091_p2 = scmp.lt.s32.totalorder %s1089_s30, %s1083_s21 }
  0x1c   : > { %349 = vperm.xlu0 %1055, %v1290_v7   ;;  %p1085_p13 = pnand %p1084_p12, %p1251_p4 }
  0x1d   : > { %1058 = vset.pattern.permute.xlu1 %v1163_v2  ;;  %p1092_p3 = por %p1091_p2, %p1090_p1 }
  0x1e   : > { %321 = vperm.xlu1 %1058, %v303_v8   ;;  %p1086_p0 = pneg %p1085_p13 }
  0x20   : > { %1060 = vset.pattern.permute.xlu0 %v1164_v6  ;;  %p1093_p5 = pnand %p1092_p3, %p1086_p0 }
  0x21   : > { %362 = vperm.xlu0 %1060, %v301_v1  }
  0x22   : > { %1059 = vset.pattern.permute.xlu1 %v1165_v9 }
  0x23   : > { %390 = vperm.xlu1 %1059, %v301_v1  }
  0x25   : > { %370 = vperm.xlu0 %1060, %v303_v8  }
  0x27   : > { %394 = vperm.xlu1 %1059, %v302_v4  }
  0x29   : > { %1064 = vset.pattern.permute.xlu0 %v1166_v10 }
  0x2a   : > { %422 = vperm.xlu0 %1064, %v302_v4  }
  0x2b   : > { %1061 = vset.pattern.permute.xlu1 %v1163_v2 }
  0x2c   : > { %354 = vperm.xlu1 %1061, %v1299_v11  }
  0x2e   : > { %426 = vperm.xlu0 %1064, %v303_v8  }
  0x30   : > { %1062 = vset.pattern.permute.xlu1 %v1164_v6 }
  0x31   : > { %374 = vperm.xlu1 %1062, %v304_v5  }
  0x32   : > { %1067 = vset.pattern.permute.xlu0 %v1164_v6 }
  0x33   : > { %456 = vperm.xlu0 %1067, %v1269_v0  }
  0x35   : > { %1063 = vset.pattern.permute.xlu1 %v1166_v10 }
  0x36   : > { %418 = vperm.xlu1 %1063, %v301_v1  }
  0x37   : > { %468 = vperm.xlu0 %1067, %v1299_v11  }
  0x3a   : > { %1065 = vset.pattern.permute.xlu1 %v1165_v9 }
  0x3b   : > { %398 = vperm.xlu1 %1065, %v303_v8   ;;  %1070 = vset.pattern.permute.xlu0 %v1165_v9 }
  0x3c   : > { %552 = vperm.xlu0 %1070, %v1278_v3  }
  0x3f   : > { %402 = vperm.xlu1 %1065, %v304_v5  }
  0x40   : > { %1071 = vset.pattern.permute.xlu0 %v1166_v10 }
  0x41   : > { %643 = vperm.xlu0 %1071, %v1269_v0  }
  0x43   : > { %1066 = vset.pattern.permute.xlu1 %v1166_v10 }
  0x44   : > { %430 = vperm.xlu1 %1066, %v304_v5  }
  0x45   : > { %655 = vperm.xlu0 %1071, %v1299_v11  }
  0x48   : > { %1068 = vset.pattern.permute.xlu1 %v1164_v6 }
  0x49   : > { %460 = vperm.xlu1 %1068, %v1278_v3  }
  0x4d   : > { %464 = vperm.xlu1 %1068, %v1290_v7  }
  0x51   : > { %1069 = vset.pattern.permute.xlu1 %v1165_v9 }
  0x52   : > { %548 = vperm.xlu1 %1069, %v1269_v0  }
  0x56   : > { %556 = vperm.xlu1 %1069, %v1290_v7  }
  0x5a   : > { %560 = vperm.xlu1 %1069, %v1299_v11  }
  0x5e   : > { %1072 = vset.pattern.permute.xlu1 %v1166_v10 }
  0x5f   : > { %647 = vperm.xlu1 %1072, %v1278_v3  }
  0x63   : > { %651 = vperm.xlu1 %1072, %v1290_v7  }
  0x8f   : > { %v340_v13 = vpop.permute.xlu1 %339  ;;  %v312_v14 = vpop.permute.xlu0 %311 }
  0x90   : > { %v333_v36 = vmul.f32 %v332_v29, %v312_v14 }
  0x92   : > { %v357_v44 = vadd.f32 %v340_v13, %v333_v36 }
  0x93   : > { %v345_v15 = vpop.permute.xlu1 %344  ;;  %v317_v16 = vpop.permute.xlu0 %316 }
  0x94   : > { %v334_v33 = vmul.f32 %v332_v29, %v317_v16 }
  0x96   : > { %v358_v39 = vadd.f32 %v345_v15, %v334_v33 }
  0x97   : > { %v327_v17 = vpop.permute.xlu0 %326 }
  0x98   : > { %v367_v18 = vpop.permute.xlu1 %366  ;;  %v336_v2 = vmul.f32 %v332_v29, %v327_v17  ;;  %v1076_v17 = vld [vmem:[%s1444_s3 + $0x8] sm:$0xff]  }
  0x99   : > { %v382_v37 = vmul.f32 %v380_v30, %v367_v18 }
  0x9b   : > { %v350_v20 = vpop.permute.xlu0 %349  ;;  %v386_v45 = vadd.f32 %v382_v37, %v358_v39 }
  0x9d   : > { %v322_v21 = vpop.permute.xlu1 %321 }
  0x9e   : > { %v335_v55 = vmul.f32 %v332_v29, %v322_v21 }
  0xa0   : > { %v363_v24 = vpop.permute.xlu0 %362  ;;  %v359_v61 = vadd.f32 %v350_v20, %v335_v55 }
  0xa1   : > { %v381_v40 = vmul.f32 %v380_v30, %v363_v24 }
  0xa2   : > { %v391_v23 = vpop.permute.xlu1 %390 }
  0xa3   : > { %v385_v47 = vadd.f32 %v381_v40, %v357_v44  ;;  %v409_v48 = vmul.f32 %v408_v38, %v391_v23  ;;  %v1077_v23 = vld [vmem:[%s1445_s4] sm:$0xff]  }
  0xa4   : > { %v371_v32 = vpop.permute.xlu0 %370  ;;  %973 = vmatprep.mubr.msk.bf16.mxu1 %vm481_vm0, %v1077_v23 }
  0xa5   : > { %v413_v52 = vadd.f32 %v409_v48, %v385_v47  ;;  %v383_v57 = vmul.f32 %v380_v30, %v371_v32 }
  0xa6   : > { %v395_v28 = vpop.permute.xlu1 %394 }
  0xa7   : > { %v410_v41 = vmul.f32 %v408_v38, %v395_v28  ;;  %v387_v4 = vadd.f32 %v383_v57, %v359_v61 }
  0xa9   : > { %v423_v43 = vpop.permute.xlu0 %422  ;;  %v414_v49 = vadd.f32 %v410_v41, %v386_v45 }
  0xaa   : > { %v438_v50 = vmul.f32 %v436_v42, %v423_v43  ;;  %v1079_v43 = vld [vmem:[%s1446_s5] sm:$0xff]  }
  0xab   : > { %v355_v35 = vpop.permute.xlu1 %354 }
  0xac   : > { %v1323_v53 = vadd.f32 %v438_v50, %v414_v49  ;;  %v360_v8 = vadd.f32 %v355_v35, %v336_v2 }
  0xad   : > { %v427_v1 = vpop.permute.xlu0 %426 }
  0xae   : > { %v446_v58 = vmax.f32 %v1323_v53, 0.0  ;;  %v439_v10 = vmul.f32 %v436_v42, %v427_v1  ;;  %v1080_v53 = vld [vmem:[%s1446_s5 + $0x8] sm:$0xff]  }
  0xb0   : > { %v375_v46 = vpop.permute.xlu1 %374 }
  0xb1   : > { %v384_v5 = vmul.f32 %v380_v30, %v375_v46 }
  0xb2   : > { %v457_v25 = vpop.permute.xlu0 %456 }
  0xb3   : > { %v388_v13 = vadd.f32 %v384_v5, %v360_v8 }
  0xb5   : > { %v419_v51 = vpop.permute.xlu1 %418 }
  0xb6   : > { %v437_v54 = vmul.f32 %v436_v42, %v419_v51  ;;  %v469_v28 = vpop.permute.xlu0 %468 }
  0xb8   : > { %v1325_v56 = vadd.f32 %v437_v54, %v413_v52 }
  0xba   : > { %v445_v59 = vmax.f32 %v1325_v56, 0.0  ;;  %v399_v60 = vpop.permute.xlu1 %398 }
  0xbb   : > { %v411_v62 = vmul.f32 %v408_v38, %v399_v60  ;;  %v553_v48 = vpop.permute.xlu0 %552 }
  0xbc   : > { %v453_v63 = vpack.c.bf16 %v446_v58, %v445_v59 }
  0xbd   : > { %v415_v9 = vadd.f32 %v411_v62, %v387_v4 }
  0xbe   : > { %v403_v6 = vpop.permute.xlu1 %402  ;;  %961 = vmatprep.subr.bf16.mxu0 %v453_v63 }
  0xbf   : > { %962 = vmatpush3.bf16.msra.mxu0 %v453_v63  ;;  %v412_v12 = vmul.f32 %v408_v38, %v403_v6  ;;  %v443_v15 = vadd.f32 %v439_v10, %v415_v9  ;;  %v1167_v6 = vmov 4  }
  0xc0   : > { %1073 = vset.pattern.permute.xlu1 %v1167_v6  ;;  %1074 = vset.pattern.permute.xlu0 %v1167_v6  ;;  %v644_v9 = vpop.permute.xlu0 %643 }
  0xc1   : > { %v416_v16 = vadd.f32 %v412_v12, %v388_v13  ;;  %v447_v20 = vmax.f32 %v443_v15, 0.0  ;;  %734 = vperm.xlu1 %1073, %v1269_v0   ;;  %738 = vperm.xlu0 %1074, %v1278_v3  }
  0xc3   : > { %v431_v14 = vpop.permute.xlu1 %430 }
  0xc4   : > { %v440_v18 = vmul.f32 %v436_v42, %v431_v14  ;;  %v1078_v42 = vld [vmem:[%s1445_s4 + $0x8] sm:$0xff]   ;;  %v656_v13 = vpop.permute.xlu0 %655 }
  0xc5   : > { %742 = vperm.xlu1 %1073, %v1290_v7  }
  0xc6   : > { %v444_v19 = vadd.f32 %v440_v18, %v416_v16 }
  0xc8   : > { %v448_v21 = vmax.f32 %v444_v19, 0.0  ;;  %v461_v24 = vpop.permute.xlu1 %460 }
  0xc9   : > { %746 = vperm.xlu1 %1073, %v1299_v11   ;;  %v1082_v11 = vld [vmem:[%s1447_s6 + $0x8] sm:$0xff]  }
  0xca   : > { %v454_v22 = vpack.c.bf16 %v448_v21, %v447_v20 }
  0xcc   : > { %963 = vmatprep.subr.bf16.mxu0 %v454_v22  ;;  %v465_v26 = vpop.permute.xlu1 %464 }
  0xcd   : > { %964 = vmatpush3.bf16.msra.mxu0 %v454_v22 }
  0xd0   : > { %966 = vmatmul.mubr.msk.bf16.vlgmr.msra.gmra.mrb[0].mxu0 %vm481_vm0, %v1076_v17 }
  0xd1   : > { %981 = vmatprep.mubr.msk.bf16.mxu0 %vm481_vm0, %v1079_v43  ;;  %v549_v44 = vpop.permute.xlu1 %548 }
  0xd5   : > { %v557_v45 = vpop.permute.xlu1 %556 }
  0xd9   : > { %v561_v49 = vpop.permute.xlu1 %560 }
  0xde   : > { %v648_v8 = vpop.permute.xlu1 %647 }
  0xe2   : > { %v652_v10 = vpop.permute.xlu1 %651 }
 0x1a3   : > { %v967_v27 = vpop.f32.mrb[0].mxu0 }
 0x1a4   : > { %v531_v29 = vadd.f32 %v967_v27, %v465_v26  ;;  %v522_v30 = vpop.f32.mrb[1].mxu0 }
 0x1a5   : > { %v523_v31 = vadd.f32 %v522_v30, %v457_v25  ;;  %v968_v32 = vpop.f32.mrb[2].mxu0 }
 0x1a6   : > { %v534_v33 = vadd.f32 %v968_v32, %v469_v28  ;;  %v525_v34 = vpop.f32.mrb[3].mxu0  ;;  %v539_v36 = vmax.f32 %v531_v29, 0.0  ;;  %v739_v29 = vpop.permute.xlu0 %738 }
 0x1a7   : > { %v526_v35 = vadd.f32 %v525_v34, %v461_v24  ;;  %v537_v38 = vmax.f32 %v523_v31, 0.0  ;;  %v735_v24 = vpop.permute.xlu1 %734 }
 0x1a8   : > { %v540_v37 = vmax.f32 %v534_v33, 0.0 }
 0x1a9   : > { %v538_v39 = vmax.f32 %v526_v35, 0.0 }
 0x1aa   : > { %v546_v40 = vpack.c.bf16 %v540_v37, %v539_v36 }
 0x1ab   : > { %v545_v41 = vpack.c.bf16 %v538_v39, %v537_v38  ;;  %v743_v25 = vpop.permute.xlu1 %742 }
 0x1ad   : > { %969 = vmatprep.subr.bf16.mxu1 %v545_v41 }
 0x1ae   : > { %970 = vmatpush3.bf16.msra.mxu1 %v545_v41 }
 0x1af   : > { %971 = vmatprep.subr.bf16.mxu1 %v546_v40  ;;  %v747_v30 = vpop.permute.xlu1 %746 }
 0x1b2   : > { %972 = vmatpush3.bf16.msra.mxu1 %v546_v40 }
 0x1b5   : > { %974 = vmatmul.mubr.msk.bf16.vlgmr.msra.gmra.mrb[0].mxu1 %vm481_vm0, %v1078_v42 }
 0x288   : > { %v975_v46 = vpop.f32.mrb[0].mxu1 }
 0x289   : > { %v613_v47 = vpop.f32.mrb[1].mxu1  ;;  %v622_v50 = vadd.f32 %v975_v46, %v557_v45 }
 0x28a   : > { %v614_v51 = vadd.f32 %v613_v47, %v549_v44  ;;  %v976_v52 = vpop.f32.mrb[2].mxu1 }
 0x28b   : > { %v625_v54 = vadd.f32 %v976_v52, %v561_v49  ;;  %v616_v55 = vpop.f32.mrb[3].mxu1  ;;  %v630_v62 = vadd.f32 %v622_v50, %v447_v20 }
 0x28c   : > { %v1351_v57 = vadd.f32 %v614_v51, %v445_v59  ;;  %v617_v60 = vadd.f32 %v616_v55, %v553_v48 }
 0x28d   : > { %v1353_v61 = vadd.f32 %v625_v54, %v448_v21  ;;  %v634_v5 = vmax.f32 %v630_v62, 0.0 }
 0x28e   : > { %v1357_v63 = vadd.f32 %v617_v60, %v446_v58  ;;  %v632_v1 = vmax.f32 %v1351_v57, 0.0  ;;  %v1081_v58 = vld [vmem:[%s1447_s6] sm:$0xff]  }
 0x28f   : > { %v635_v2 = vmax.f32 %v1353_v61, 0.0  ;;  %989 = vmatprep.mubr.msk.bf16.mxu1 %vm481_vm0, %v1081_v58 }
 0x290   : > { %v633_v4 = vmax.f32 %v1357_v63, 0.0 }
 0x291   : > { %v641_v59 = vpack.c.bf16 %v635_v2, %v634_v5 }
 0x292   : > { %v640_v56 = vpack.c.bf16 %v633_v4, %v632_v1 }
 0x294   : > { %977 = vmatprep.subr.bf16.mxu0 %v640_v56 }
 0x295   : > { %978 = vmatpush3.bf16.msra.mxu0 %v640_v56 }
 0x296   : > { %979 = vmatprep.subr.bf16.mxu0 %v641_v59 }
 0x299   : > { %980 = vmatpush3.bf16.msra.mxu0 %v641_v59 }
 0x29c   : > { %982 = vmatmul.mubr.msk.bf16.vlgmr.msra.gmra.mrb[4].mxu0 %vm481_vm0, %v1080_v53 }
 0x36f   : > { %v983_v12 = vpop.f32.mrb[4].mxu0 }
 0x370   : > { %v717_v14 = vadd.f32 %v983_v12, %v652_v10  ;;  %v708_v15 = vpop.f32.mrb[5].mxu0 }
 0x371   : > { %v709_v16 = vadd.f32 %v708_v15, %v644_v9  ;;  %v984_v18 = vpop.f32.mrb[6].mxu0 }
 0x372   : > { %v720_v19 = vadd.f32 %v984_v18, %v656_v13  ;;  %v711_v20 = vpop.f32.mrb[7].mxu0  ;;  %v725_v0 = vmax.f32 %v717_v14, 0.0 }
 0x373   : > { %v712_v21 = vadd.f32 %v711_v20, %v648_v8  ;;  %v723_v3 = vmax.f32 %v709_v16, 0.0 }
 0x374   : > { %v726_v22 = vmax.f32 %v720_v19, 0.0 }
 0x375   : > { %v724_v17 = vmax.f32 %v712_v21, 0.0 }
 0x376   : > { %v732_v7 = vpack.c.bf16 %v726_v22, %v725_v0 }
 0x377   : > { %v731_v23 = vpack.c.bf16 %v724_v17, %v723_v3 }
 0x379   : > { %985 = vmatprep.subr.bf16.mxu1 %v731_v23 }
 0x37a   : > { %986 = vmatpush3.bf16.msra.mxu1 %v731_v23 }
 0x37b   : > { %987 = vmatprep.subr.bf16.mxu1 %v732_v7 }
 0x37e   : > { %988 = vmatpush3.bf16.msra.mxu1 %v732_v7 }
 0x381   : > { %990 = vmatmul.mubr.msk.bf16.vlgmr.msra.gmra.mrb[4].mxu1 %vm481_vm0, %v1082_v11 }
 0x454   : > { %v991_v26 = vpop.f32.mrb[4].mxu1 }
 0x455   : > { %v808_v27 = vadd.f32 %v991_v26, %v743_v25  ;;  %v799_v28 = vpop.f32.mrb[5].mxu1 }
 0x456   : > { %v800_v31 = vadd.f32 %v799_v28, %v735_v24  ;;  %v992_v32 = vpop.f32.mrb[6].mxu1 }
 0x457   : > { %v816_v33 = vadd.f32 %v808_v27, %v634_v5  ;;  %v811_v34 = vadd.f32 %v992_v32, %v747_v30  ;;  %v802_v35 = vpop.f32.mrb[7].mxu1 }
 0x458   : > { %v814_v36 = vadd.f32 %v800_v31, %v632_v1  ;;  %v803_v37 = vadd.f32 %v802_v35, %v739_v29 }
 0x459   : > { %v820_v38 = vmax.f32 %v816_v33, 0.0  ;;  %v817_v39 = vadd.f32 %v811_v34, %v635_v2 }
 0x45a   : > { %v818_v40 = vmax.f32 %v814_v36, 0.0  ;;  %v815_v41 = vadd.f32 %v803_v37, %v633_v4 }
 0x45b   : > { %824 = vst [vmem:[%s291_s15 + $0x10] sm:$0xff] %v820_v38  ;;  %v821_v42 = vmax.f32 %v817_v39, 0.0 }
 0x45c   : > { %822 = vst [vmem:[%s291_s15] sm:$0xff] %v818_v40  ;;  %v819_v43 = vmax.f32 %v815_v41, 0.0 }
 0x45d   : > { %825 = vst [vmem:[%s291_s15 + $0x18] sm:$0xff] %v821_v42 }
 0x45e   : > { %823 = vst [vmem:[%s291_s15 + $0x8] sm:$0xff] %v819_v43 }
 0x45f   : > { %1096 = shalt.err (!%p1093_p5)
}
 0x460   : > { %s1097_s8 = scalar_lea.hbm %s1393_s27, 512  ;;  %s1101_s15 = scalar_lea.hbm %s1448_s7, 1024 }
 0x461   : > { %p1098_p6 = scmp.ne.s32.totalorder %s1393_s27, %s1097_s8  ;;  %p1102_p10 = scmp.lt.u32.totalorder %s1393_s27, %s1448_s7 }
 0x462   : > { %p1103_p11 = scmp.lt.u32.totalorder %s1101_s15, %s1097_s8  ;;  %p1105_p13 = scmp.lt.u32.totalorder %s1097_s8, %s1393_s27 }
 0x463   : > { %p1099_p7 = pnand %p1098_p6, %p1251_p4 }
 0x464   : > { %p1104_p12 = por %p1103_p11, %p1102_p10 }
 0x465   : > { %p1100_p9 = pneg %p1099_p7 }
 0x466   : > { %p1106_p0 = por %p1105_p13, %p1104_p12 }
 0x468   : > { %p1107_p1 = pnand %p1106_p0, %p1100_p9 }
 0x46a   : > { %1110 = shalt.err (!%p1107_p1)
}
 0x46b   : > { %s1169_s19 = smov 128   ;;  %s1170_s21 = smov 8  }
 0x46c   : > { %993 = dma.vmem_to_hbm [thread:$0]  (%p1251_p4), %s1388_s16, 512, %s1393_s27, %s1395_s20, %s1169_s19, %s1169_s19, %s1170_s21  }
 0x46d PF: > { %p999_p2 = scmp.ge.s32.totalorder %s1161_s29, 2  ;;  %s856_s22 = sand.u32 1, %s1141_s24  }
 0x46e   : > { %s857_s23 = scalar_lea.sflag [#allocation3], %s856_s22 }
 0x46f   : > { %p996_p3 = pnand %p999_p2, %p1258_p8 }
 0x471   : > { %1136 = dma.done.wait (!%p996_p3), %s857_s23, 512  }
 0x472   : > { %1138 = vsyncadd (!%p996_p3), %s857_s23, 4294966784  ;;  %s20_s29 = sadd.s32 1, %s1161_s29   ;;  %s1451_s24 = smov %s1145_s25 }
 0x473   : > { %p17_p5 = scmp.ge.s32.totalorder %s20_s29, 4   ;;  %s1452_s25 = smov %s1149_s26 }
 0x474   : > { %s1453_s26 = smov %s1264_s14  ;;  %s1454_s27 = smov %s1157_s28 }
 0x475   : > { %s1455_s28 = smov %s1457_s9  ;;  %19 = sbr.rel (!%p17_p5) target bundleno = 4 (0x4), region = 83 }
 0x47c   :  { %862 = vsyncpa [#allocation3], 1 }
 0x47d   :  { %864 = vsyncpa [#allocation3 + $0x1], 1 }

// kernel: tpu_custom_call.1
= control target key start
LH: loop header
LB: loop body
LE: loop exit
PB: predicated region body
PF: predicated region fallthrough
CT: control target
= control target key end

     0   :  { %12 = vsyncpa [#allocation3], 0  ;;  %s1441_s0 = inlined_call_operand.vmem [shape: f32[2,4,128], index: 0, kind: input, shape index: {}]   ;;  %s1442_s1 = inlined_call_operand.vmem [shape: f32[32,5], index: 1, kind: input, shape index: {}]   ;;  %s1443_s2 = inlined_call_operand.vmem [shape: f32[32,4], index: 2, kind: input, shape index: {}]   ;;  %s1444_s3 = inlined_call_operand.vmem [shape: bf16[32,32], index: 3, kind: input, shape index: {}]   ;;  %s1445_s4 = inlined_call_operand.vmem [shape: bf16[32,32], index: 4, kind: input, shape index: {}]   ;;  %s1446_s5 = inlined_call_operand.vmem [shape: bf16[32,32], index: 5, kind: input, shape index: {}]   ;;  %s1447_s6 = inlined_call_operand.vmem [shape: bf16[32,32], index: 6, kind: input, shape index: {}]   ;;  %s1448_s7 = inlined_call_operand.hbm [shape: f32[2,32,128], index: 7, kind: output, shape index: {}]  }
   0x1   :  { %14 = vsyncpa [#allocation3 + $0x1], 0  ;;  %s1211_s24 = smov 0   ;;  %s1213_s25 = smov 0  }
   0x2   :  { %s1215_s26 = smov 0   ;;  %s1217_s27 = smov 0  }
   0x3   :  { %s1219_s28 = smov 0   ;;  %s1221_s29 = smov 0  }
   0x4 LB: > { %s916_s30 = sadd.s32 4294967295, %s1161_s29   ;;  %s917_s8 = sadd.s32 4294967294, %s1161_s29   ;;  %s1161_s29 = sphi %s1221_s29, %s20_s29   ;;  %s1157_s28 = sphi %s1219_s28, %s1455_s28   ;;  %s1153_s27 = sphi %s1217_s27, %s1454_s27   ;;  %s1149_s26 = sphi %s1215_s26, %s1453_s26   ;;  %s1145_s25 = sphi %s1213_s25, %s1452_s25   ;;  %s1141_s24 = sphi %s1211_s24, %s1451_s24  }
   0x5   : > { %s32_s9 = sadd.s32 1, %s1157_s28  ;;  %s195_s10 = sadd.s32 1, %s1149_s26 }
   0x6   : > { %p34_p0 = scmp.ge.s32.totalorder %s32_s9, 2  ;;  %p205_p1 = scmp.ne.s32.totalorder %s1149_s26, %s1145_s25 }
   0x7   : > { %p206_p2 = scmp.eq.s32.totalorder %s916_s30, 1  ;;  %p211_p3 = scmp.ne.s32.totalorder %s1145_s25, %s1141_s24 }
   0x8   : > { %s1457_s9 = smov (%p34_p0, %s32_s9), 0  ;;  %p212_p5 = scmp.eq.s32.totalorder %s917_s8, 1 }
   0x9   : > { %p1251_p4 = por %p206_p2, %p205_p1  ;;  %s190_s12 = ssub.s32 %s1157_s28, %s1457_s9 }
   0xa   : > { %p920_p6 = scmp.ge.s32.totalorder %s1161_s29, 1  ;;  %p193_p7 = scmp.eq.s32.totalorder %s190_s12, 0 }
   0xb   : > { %p1258_p8 = por %p212_p5, %p211_p3  ;;  %p258_p9 = scmp.lt.s32.totalorder %s1161_s29, 3 }
   0xc   : > { %s1264_s14 = scalar_select %p193_p7, %s1149_s26, %s195_s10  }
   0xd   : > { %p259_p10 = pnand %p920_p6, %p258_p9 }
   0xe   : > { %v1269_v0 = vld [vmem:[%s1442_s1] sm:$0xff] (!%p259_p10)  ;;  %v1163_v2 = vmov (!%p259_p10), 0   ;;  %v1278_v3 = vld [vmem:[%s1442_s1 + $0x8] sm:$0xff] (!%p259_p10)  ;;  %v304_v5 = vld [vmem:[%s1443_s2 + $0x18] sm:$0xff] (!%p259_p10)  ;;  %v1164_v6 = vmov (!%p259_p10), 1   ;;  %v1165_v9 = vmov (!%p259_p10), 2   ;;  %v329_v19 = vlaneseq (!%p259_p10) }
   0xf   : > { %262 = sbr.rel (%p259_p10) target bundleno = 1133 (0x46d), region = 48  ;;  %v301_v1 = vld [vmem:[%s1443_s2] sm:$0xff] (!%p259_p10)  ;;  %1056 = vset.pattern.permute.xlu1 (!%p259_p10), %v1163_v2  ;;  %1055 = vset.pattern.permute.xlu0 (!%p259_p10), %v1163_v2  ;;  %v302_v4 = vld [vmem:[%s1443_s2 + $0x8] sm:$0xff] (!%p259_p10)  ;;  %v1290_v7 = vld [vmem:[%s1442_s1 + $0x10] sm:$0xff] (!%p259_p10)  ;;  %v1166_v10 = vmov (!%p259_p10), 3   ;;  %vm481_vm0 = vcmask (!%p259_p10), 261120  }
  0x10   : > { %339 = vperm.xlu1 (!%p259_p10), %1056, %v1269_v0   ;;  %311 = vperm.xlu0 (!%p259_p10), %1055, %v301_v1   ;;  %v303_v8 = vld [vmem:[%s1443_s2 + $0x10] sm:$0xff] (!%p259_p10)  ;;  %v1299_v11 = vld [vmem:[%s1442_s1 + $0x18] sm:$0xff] (!%p259_p10)  ;;  %v1075_v12 = vld [vmem:[%s1444_s3] sm:$0xff] (!%p259_p10)   ;;  %p292_p11 = scmp.lt.s32.totalorder (!%p259_p10), %s1153_s27, 1  ;;  %v330_v22 = vshrl.u32 (!%p259_p10), %v329_v19, 7  ;;  %s289_s10 = sand.u32 (!%p259_p10), 1, %s1145_s25  }
  0x11   : > { %965 = vmatprep.mubr.msk.bf16.mxu0 (!%p259_p10), %vm481_vm0, %v1075_v12  ;;  %s921_s12 = sshll.u32 (!%p259_p10), %s289_s10, 5  ;;  %s944_s17 = sshll.u32 (!%p259_p10), %s1153_s27, 9 }
  0x12   : > { %v331_v25 = vsub.s32 (!%p259_p10), 0, %v330_v22  ;;  %v379_v26 = vsub.s32 (!%p259_p10), 1, %v330_v22  ;;  %v407_v31 = vsub.s32 (!%p259_p10), 2, %v330_v22  ;;  %v435_v34 = vsub.s32 (!%p259_p10), 3, %v330_v22  ;;  %s291_s15 = scalar_lea.vmem (!%p259_p10), [#allocation2], %s921_s12  ;;  %s1168_s22 = smov (!%p259_p10), [#allocation2]  }
  0x13   : > { %s841_s16 = sshll.u32 (!%p259_p10), %s291_s15, 4  ;;  %s1087_s23 = sshll.u32 (!%p259_p10), %s1168_s22, 4  ;;  %s1388_s16 = int_to_ptr.vmem [resolvable:$true] %s841_s16  ;;  %s1088_s23 = int_to_ptr.vmem [resolvable:$false] %s1087_s23 }
  0x14   : > { %344 = vperm.xlu1 (!%p259_p10), %1056, %v1278_v3   ;;  %316 = vperm.xlu0 (!%p259_p10), %1055, %v302_v4   ;;  %p1090_p1 = scmp.lt.s32.totalorder (!%p259_p10), %s1388_s16, %s1088_s23 }
  0x16   : > { %s293_s20 = scalar_select %p292_p11, %s1153_s27, 1 }
  0x17   : > { %s1393_s27 = scalar_lea.hbm %s1448_s7, %s944_s17 }
  0x18   : > { %1057 = vset.pattern.permute.xlu1 %v1164_v6  ;;  %326 = vperm.xlu0 %1055, %v304_v5   ;;  %s922_s21 = sshll.u32 %s293_s20, 2  ;;  %s1395_s20 = scalar_lea.sflag [#allocation3], %s289_s10 }
  0x19   : > { %366 = vperm.xlu1 %1057, %v302_v4   ;;  %s298_s30 = scalar_lea.vmem %s1441_s0, %s922_s21  ;;  %s1083_s21 = scalar_lea.vmem %s1388_s16, 512 }
  0x1a   : > { %v300_v27 = vld [vmem:[%s298_s30] sm:$0xf]  ;;  %p1084_p12 = scmp.ne.s32.totalorder %s1388_s16, %s1083_s21  ;;  %s1089_s30 = scalar_lea.vmem %s1088_s23, 1024 }
  0x1b   : > { %v332_v29 = vrot.slane %v300_v27, %v331_v25  ;;  %v380_v30 = vrot.slane %v300_v27, %v379_v26  ;;  %v408_v38 = vrot.slane %v300_v27, %v407_v31  ;;  %v436_v42 = vrot.slane %v300_v27, %v435_v34  ;;  %p1091_p2 = scmp.lt.s32.totalorder %s1089_s30, %s1083_s21 }
  0x1c   : > { %349 = vperm.xlu0 %1055, %v1290_v7   ;;  %p1085_p13 = pnand %p1084_p12, %p1251_p4 }
  0x1d   : > { %1058 = vset.pattern.permute.xlu1 %v1163_v2  ;;  %p1092_p3 = por %p1091_p2, %p1090_p1 }
  0x1e   : > { %321 = vperm.xlu1 %1058, %v303_v8   ;;  %p1086_p0 = pneg %p1085_p13 }
  0x20   : > { %1060 = vset.pattern.permute.xlu0 %v1164_v6  ;;  %p1093_p5 = pnand %p1092_p3, %p1086_p0 }
  0x21   : > { %362 = vperm.xlu0 %1060, %v301_v1  }
  0x22   : > { %1059 = vset.pattern.permute.xlu1 %v1165_v9 }
  0x23   : > { %390 = vperm.xlu1 %1059, %v301_v1  }
  0x25   : > { %370 = vperm.xlu0 %1060, %v303_v8  }
  0x27   : > { %394 = vperm.xlu1 %1059, %v302_v4  }
  0x29   : > { %1064 = vset.pattern.permute.xlu0 %v1166_v10 }
  0x2a   : > { %422 = vperm.xlu0 %1064, %v302_v4  }
  0x2b   : > { %1061 = vset.pattern.permute.xlu1 %v1163_v2 }
  0x2c   : > { %354 = vperm.xlu1 %1061, %v1299_v11  }
  0x2e   : > { %426 = vperm.xlu0 %1064, %v303_v8  }
  0x30   : > { %1062 = vset.pattern.permute.xlu1 %v1164_v6 }
  0x31   : > { %374 = vperm.xlu1 %1062, %v304_v5  }
  0x32   : > { %1067 = vset.pattern.permute.xlu0 %v1164_v6 }
  0x33   : > { %456 = vperm.xlu0 %1067, %v1269_v0  }
  0x35   : > { %1063 = vset.pattern.permute.xlu1 %v1166_v10 }
  0x36   : > { %418 = vperm.xlu1 %1063, %v301_v1  }
  0x37   : > { %468 = vperm.xlu0 %1067, %v1299_v11  }
  0x3a   : > { %1065 = vset.pattern.permute.xlu1 %v1165_v9 }
  0x3b   : > { %398 = vperm.xlu1 %1065, %v303_v8   ;;  %1070 = vset.pattern.permute.xlu0 %v1165_v9 }
  0x3c   : > { %552 = vperm.xlu0 %1070, %v1278_v3  }
  0x3f   : > { %402 = vperm.xlu1 %1065, %v304_v5  }
  0x40   : > { %1071 = vset.pattern.permute.xlu0 %v1166_v10 }
  0x41   : > { %643 = vperm.xlu0 %1071, %v1269_v0  }
  0x43   : > { %1066 = vset.pattern.permute.xlu1 %v1166_v10 }
  0x44   : > { %430 = vperm.xlu1 %1066, %v304_v5  }
  0x45   : > { %655 = vperm.xlu0 %1071, %v1299_v11  }
  0x48   : > { %1068 = vset.pattern.permute.xlu1 %v1164_v6 }
  0x49   : > { %460 = vperm.xlu1 %1068, %v1278_v3  }
  0x4d   : > { %464 = vperm.xlu1 %1068, %v1290_v7  }
  0x51   : > { %1069 = vset.pattern.permute.xlu1 %v1165_v9 }
  0x52   : > { %548 = vperm.xlu1 %1069, %v1269_v0  }
  0x56   : > { %556 = vperm.xlu1 %1069, %v1290_v7  }
  0x5a   : > { %560 = vperm.xlu1 %1069, %v1299_v11  }
  0x5e   : > { %1072 = vset.pattern.permute.xlu1 %v1166_v10 }
  0x5f   : > { %647 = vperm.xlu1 %1072, %v1278_v3  }
  0x63   : > { %651 = vperm.xlu1 %1072, %v1290_v7  }
  0x8f   : > { %v340_v13 = vpop.permute.xlu1 %339  ;;  %v312_v14 = vpop.permute.xlu0 %311 }
  0x90   : > { %v333_v36 = vmul.f32 %v332_v29, %v312_v14 }
  0x92   : > { %v357_v44 = vadd.f32 %v340_v13, %v333_v36 }
  0x93   : > { %v345_v15 = vpop.permute.xlu1 %344  ;;  %v317_v16 = vpop.permute.xlu0 %316 }
  0x94   : > { %v334_v33 = vmul.f32 %v332_v29, %v317_v16 }
  0x96   : > { %v358_v39 = vadd.f32 %v345_v15, %v334_v33 }
  0x97   : > { %v327_v17 = vpop.permute.xlu0 %326 }
  0x98   : > { %v367_v18 = vpop.permute.xlu1 %366  ;;  %v336_v2 = vmul.f32 %v332_v29, %v327_v17  ;;  %v1076_v17 = vld [vmem:[%s1444_s3 + $0x8] sm:$0xff]  }
  0x99   : > { %v382_v37 = vmul.f32 %v380_v30, %v367_v18 }
  0x9b   : > { %v350_v20 = vpop.permute.xlu0 %349  ;;  %v386_v45 = vadd.f32 %v382_v37, %v358_v39 }
  0x9d   : > { %v322_v21 = vpop.permute.xlu1 %321 }
  0x9e   : > { %v335_v55 = vmul.f32 %v332_v29, %v322_v21 }
  0xa0   : > { %v363_v24 = vpop.permute.xlu0 %362  ;;  %v359_v61 = vadd.f32 %v350_v20, %v335_v55 }
  0xa1   : > { %v381_v40 = vmul.f32 %v380_v30, %v363_v24 }
  0xa2   : > { %v391_v23 = vpop.permute.xlu1 %390 }
  0xa3   : > { %v385_v47 = vadd.f32 %v381_v40, %v357_v44  ;;  %v409_v48 = vmul.f32 %v408_v38, %v391_v23  ;;  %v1077_v23 = vld [vmem:[%s1445_s4] sm:$0xff]  }
  0xa4   : > { %v371_v32 = vpop.permute.xlu0 %370  ;;  %973 = vmatprep.mubr.msk.bf16.mxu1 %vm481_vm0, %v1077_v23 }
  0xa5   : > { %v413_v52 = vadd.f32 %v409_v48, %v385_v47  ;;  %v383_v57 = vmul.f32 %v380_v30, %v371_v32 }
  0xa6   : > { %v395_v28 = vpop.permute.xlu1 %394 }
  0xa7   : > { %v410_v41 = vmul.f32 %v408_v38, %v395_v28  ;;  %v387_v4 = vadd.f32 %v383_v57, %v359_v61 }
  0xa9   : > { %v423_v43 = vpop.permute.xlu0 %422  ;;  %v414_v49 = vadd.f32 %v410_v41, %v386_v45 }
  0xaa   : > { %v438_v50 = vmul.f32 %v436_v42, %v423_v43  ;;  %v1079_v43 = vld [vmem:[%s1446_s5] sm:$0xff]  }
  0xab   : > { %v355_v35 = vpop.permute.xlu1 %354 }
  0xac   : > { %v1323_v53 = vadd.f32 %v438_v50, %v414_v49  ;;  %v360_v8 = vadd.f32 %v355_v35, %v336_v2 }
  0xad   : > { %v427_v1 = vpop.permute.xlu0 %426 }
  0xae   : > { %v446_v58 = vmax.f32 %v1323_v53, 0.0  ;;  %v439_v10 = vmul.f32 %v436_v42, %v427_v1  ;;  %v1080_v53 = vld [vmem:[%s1446_s5 + $0x8] sm:$0xff]  }
  0xb0   : > { %v375_v46 = vpop.permute.xlu1 %374 }
  0xb1   : > { %v384_v5 = vmul.f32 %v380_v30, %v375_v46 }
  0xb2   : > { %v457_v25 = vpop.permute.xlu0 %456 }
  0xb3   : > { %v388_v13 = vadd.f32 %v384_v5, %v360_v8 }
  0xb5   : > { %v419_v51 = vpop.permute.xlu1 %418 }
  0xb6   : > { %v437_v54 = vmul.f32 %v436_v42, %v419_v51  ;;  %v469_v28 = vpop.permute.xlu0 %468 }
  0xb8   : > { %v1325_v56 = vadd.f32 %v437_v54, %v413_v52 }
  0xba   : > { %v445_v59 = vmax.f32 %v1325_v56, 0.0  ;;  %v399_v60 = vpop.permute.xlu1 %398 }
  0xbb   : > { %v411_v62 = vmul.f32 %v408_v38, %v399_v60  ;;  %v553_v48 = vpop.permute.xlu0 %552 }
  0xbc   : > { %v453_v63 = vpack.c.bf16 %v446_v58, %v445_v59 }
  0xbd   : > { %v415_v9 = vadd.f32 %v411_v62, %v387_v4 }
  0xbe   : > { %v403_v6 = vpop.permute.xlu1 %402  ;;  %961 = vmatprep.subr.bf16.mxu0 %v453_v63 }
  0xbf   : > { %962 = vmatpush3.bf16.msra.mxu0 %v453_v63  ;;  %v412_v12 = vmul.f32 %v408_v38, %v403_v6  ;;  %v443_v15 = vadd.f32 %v439_v10, %v415_v9  ;;  %v1167_v6 = vmov 4  }
  0xc0   : > { %1073 = vset.pattern.permute.xlu1 %v1167_v6  ;;  %1074 = vset.pattern.permute.xlu0 %v1167_v6  ;;  %v644_v9 = vpop.permute.xlu0 %643 }
  0xc1   : > { %v416_v16 = vadd.f32 %v412_v12, %v388_v13  ;;  %v447_v20 = vmax.f32 %v443_v15, 0.0  ;;  %734 = vperm.xlu1 %1073, %v1269_v0   ;;  %738 = vperm.xlu0 %1074, %v1278_v3  }
  0xc3   : > { %v431_v14 = vpop.permute.xlu1 %430 }
  0xc4   : > { %v440_v18 = vmul.f32 %v436_v42, %v431_v14  ;;  %v1078_v42 = vld [vmem:[%s1445_s4 + $0x8] sm:$0xff]   ;;  %v656_v13 = vpop.permute.xlu0 %655 }
  0xc5   : > { %742 = vperm.xlu1 %1073, %v1290_v7  }
  0xc6   : > { %v444_v19 = vadd.f32 %v440_v18, %v416_v16 }
  0xc8   : > { %v448_v21 = vmax.f32 %v444_v19, 0.0  ;;  %v461_v24 = vpop.permute.xlu1 %460 }
  0xc9   : > { %746 = vperm.xlu1 %1073, %v1299_v11   ;;  %v1082_v11 = vld [vmem:[%s1447_s6 + $0x8] sm:$0xff]  }
  0xca   : > { %v454_v22 = vpack.c.bf16 %v448_v21, %v447_v20 }
  0xcc   : > { %963 = vmatprep.subr.bf16.mxu0 %v454_v22  ;;  %v465_v26 = vpop.permute.xlu1 %464 }
  0xcd   : > { %964 = vmatpush3.bf16.msra.mxu0 %v454_v22 }
  0xd0   : > { %966 = vmatmul.mubr.msk.bf16.vlgmr.msra.gmra.mrb[0].mxu0 %vm481_vm0, %v1076_v17 }
  0xd1   : > { %981 = vmatprep.mubr.msk.bf16.mxu0 %vm481_vm0, %v1079_v43  ;;  %v549_v44 = vpop.permute.xlu1 %548 }
  0xd5   : > { %v557_v45 = vpop.permute.xlu1 %556 }
  0xd9   : > { %v561_v49 = vpop.permute.xlu1 %560 }
  0xde   : > { %v648_v8 = vpop.permute.xlu1 %647 }
  0xe2   : > { %v652_v10 = vpop.permute.xlu1 %651 }
 0x1a3   : > { %v967_v27 = vpop.f32.mrb[0].mxu0 }
 0x1a4   : > { %v531_v29 = vadd.f32 %v967_v27, %v465_v26  ;;  %v522_v30 = vpop.f32.mrb[1].mxu0 }
 0x1a5   : > { %v523_v31 = vadd.f32 %v522_v30, %v457_v25  ;;  %v968_v32 = vpop.f32.mrb[2].mxu0 }
 0x1a6   : > { %v534_v33 = vadd.f32 %v968_v32, %v469_v28  ;;  %v525_v34 = vpop.f32.mrb[3].mxu0  ;;  %v539_v36 = vmax.f32 %v531_v29, 0.0  ;;  %v739_v29 = vpop.permute.xlu0 %738 }
 0x1a7   : > { %v526_v35 = vadd.f32 %v525_v34, %v461_v24  ;;  %v537_v38 = vmax.f32 %v523_v31, 0.0  ;;  %v735_v24 = vpop.permute.xlu1 %734 }
 0x1a8   : > { %v540_v37 = vmax.f32 %v534_v33, 0.0 }
 0x1a9   : > { %v538_v39 = vmax.f32 %v526_v35, 0.0 }
 0x1aa   : > { %v546_v40 = vpack.c.bf16 %v540_v37, %v539_v36 }
 0x1ab   : > { %v545_v41 = vpack.c.bf16 %v538_v39, %v537_v38  ;;  %v743_v25 = vpop.permute.xlu1 %742 }
 0x1ad   : > { %969 = vmatprep.subr.bf16.mxu1 %v545_v41 }
 0x1ae   : > { %970 = vmatpush3.bf16.msra.mxu1 %v545_v41 }
 0x1af   : > { %971 = vmatprep.subr.bf16.mxu1 %v546_v40  ;;  %v747_v30 = vpop.permute.xlu1 %746 }
 0x1b2   : > { %972 = vmatpush3.bf16.msra.mxu1 %v546_v40 }
 0x1b5   : > { %974 = vmatmul.mubr.msk.bf16.vlgmr.msra.gmra.mrb[0].mxu1 %vm481_vm0, %v1078_v42 }
 0x288   : > { %v975_v46 = vpop.f32.mrb[0].mxu1 }
 0x289   : > { %v613_v47 = vpop.f32.mrb[1].mxu1  ;;  %v622_v50 = vadd.f32 %v975_v46, %v557_v45 }
 0x28a   : > { %v614_v51 = vadd.f32 %v613_v47, %v549_v44  ;;  %v976_v52 = vpop.f32.mrb[2].mxu1 }
 0x28b   : > { %v625_v54 = vadd.f32 %v976_v52, %v561_v49  ;;  %v616_v55 = vpop.f32.mrb[3].mxu1  ;;  %v630_v62 = vadd.f32 %v622_v50, %v447_v20 }
 0x28c   : > { %v1351_v57 = vadd.f32 %v614_v51, %v445_v59  ;;  %v617_v60 = vadd.f32 %v616_v55, %v553_v48 }
 0x28d   : > { %v1353_v61 = vadd.f32 %v625_v54, %v448_v21  ;;  %v634_v5 = vmax.f32 %v630_v62, 0.0 }
 0x28e   : > { %v1357_v63 = vadd.f32 %v617_v60, %v446_v58  ;;  %v632_v1 = vmax.f32 %v1351_v57, 0.0  ;;  %v1081_v58 = vld [vmem:[%s1447_s6] sm:$0xff]  }
 0x28f   : > { %v635_v2 = vmax.f32 %v1353_v61, 0.0  ;;  %989 = vmatprep.mubr.msk.bf16.mxu1 %vm481_vm0, %v1081_v58 }
 0x290   : > { %v633_v4 = vmax.f32 %v1357_v63, 0.0 }
 0x291   : > { %v641_v59 = vpack.c.bf16 %v635_v2, %v634_v5 }
 0x292   : > { %v640_v56 = vpack.c.bf16 %v633_v4, %v632_v1 }
 0x294   : > { %977 = vmatprep.subr.bf16.mxu0 %v640_v56 }
 0x295   : > { %978 = vmatpush3.bf16.msra.mxu0 %v640_v56 }
 0x296   : > { %979 = vmatprep.subr.bf16.mxu0 %v641_v59 }
 0x299   : > { %980 = vmatpush3.bf16.msra.mxu0 %v641_v59 }
 0x29c   : > { %982 = vmatmul.mubr.msk.bf16.vlgmr.msra.gmra.mrb[4].mxu0 %vm481_vm0, %v1080_v53 }
 0x36f   : > { %v983_v12 = vpop.f32.mrb[4].mxu0 }
 0x370   : > { %v717_v14 = vadd.f32 %v983_v12, %v652_v10  ;;  %v708_v15 = vpop.f32.mrb[5].mxu0 }
 0x371   : > { %v709_v16 = vadd.f32 %v708_v15, %v644_v9  ;;  %v984_v18 = vpop.f32.mrb[6].mxu0 }
 0x372   : > { %v720_v19 = vadd.f32 %v984_v18, %v656_v13  ;;  %v711_v20 = vpop.f32.mrb[7].mxu0  ;;  %v725_v0 = vmax.f32 %v717_v14, 0.0 }
 0x373   : > { %v712_v21 = vadd.f32 %v711_v20, %v648_v8  ;;  %v723_v3 = vmax.f32 %v709_v16, 0.0 }
 0x374   : > { %v726_v22 = vmax.f32 %v720_v19, 0.0 }
 0x375   : > { %v724_v17 = vmax.f32 %v712_v21, 0.0 }
 0x376   : > { %v732_v7 = vpack.c.bf16 %v726_v22, %v725_v0 }
 0x377   : > { %v731_v23 = vpack.c.bf16 %v724_v17, %v723_v3 }
 0x379   : > { %985 = vmatprep.subr.bf16.mxu1 %v731_v23 }
 0x37a   : > { %986 = vmatpush3.bf16.msra.mxu1 %v731_v23 }
 0x37b   : > { %987 = vmatprep.subr.bf16.mxu1 %v732_v7 }
 0x37e   : > { %988 = vmatpush3.bf16.msra.mxu1 %v732_v7 }
 0x381   : > { %990 = vmatmul.mubr.msk.bf16.vlgmr.msra.gmra.mrb[4].mxu1 %vm481_vm0, %v1082_v11 }
 0x454   : > { %v991_v26 = vpop.f32.mrb[4].mxu1 }
 0x455   : > { %v808_v27 = vadd.f32 %v991_v26, %v743_v25  ;;  %v799_v28 = vpop.f32.mrb[5].mxu1 }
 0x456   : > { %v800_v31 = vadd.f32 %v799_v28, %v735_v24  ;;  %v992_v32 = vpop.f32.mrb[6].mxu1 }
 0x457   : > { %v816_v33 = vadd.f32 %v808_v27, %v634_v5  ;;  %v811_v34 = vadd.f32 %v992_v32, %v747_v30  ;;  %v802_v35 = vpop.f32.mrb[7].mxu1 }
 0x458   : > { %v814_v36 = vadd.f32 %v800_v31, %v632_v1  ;;  %v803_v37 = vadd.f32 %v802_v35, %v739_v29 }
 0x459   : > { %v820_v38 = vmax.f32 %v816_v33, 0.0  ;;  %v817_v39 = vadd.f32 %v811_v34, %v635_v2 }
 0x45a   : > { %v818_v40 = vmax.f32 %v814_v36, 0.0  ;;  %v815_v41 = vadd.f32 %v803_v37, %v633_v4 }
 0x45b   : > { %824 = vst [vmem:[%s291_s15 + $0x10] sm:$0xff] %v820_v38  ;;  %v821_v42 = vmax.f32 %v817_v39, 0.0 }
 0x45c   : > { %822 = vst [vmem:[%s291_s15] sm:$0xff] %v818_v40  ;;  %v819_v43 = vmax.f32 %v815_v41, 0.0 }
 0x45d   : > { %825 = vst [vmem:[%s291_s15 + $0x18] sm:$0xff] %v821_v42 }
 0x45e   : > { %823 = vst [vmem:[%s291_s15 + $0x8] sm:$0xff] %v819_v43 }
 0x45f   : > { %1096 = shalt.err (!%p1093_p5)
}
 0x460   : > { %s1097_s8 = scalar_lea.hbm %s1393_s27, 512  ;;  %s1101_s15 = scalar_lea.hbm %s1448_s7, 1024 }
 0x461   : > { %p1098_p6 = scmp.ne.s32.totalorder %s1393_s27, %s1097_s8  ;;  %p1102_p10 = scmp.lt.u32.totalorder %s1393_s27, %s1448_s7 }
 0x462   : > { %p1103_p11 = scmp.lt.u32.totalorder %s1101_s15, %s1097_s8  ;;  %p1105_p13 = scmp.lt.u32.totalorder %s1097_s8, %s1393_s27 }
 0x463   : > { %p1099_p7 = pnand %p1098_p6, %p1251_p4 }
 0x464   : > { %p1104_p12 = por %p1103_p11, %p1102_p10 }
 0x465   : > { %p1100_p9 = pneg %p1099_p7 }
 0x466   : > { %p1106_p0 = por %p1105_p13, %p1104_p12 }
 0x468   : > { %p1107_p1 = pnand %p1106_p0, %p1100_p9 }
 0x46a   : > { %1110 = shalt.err (!%p1107_p1)
}
 0x46b   : > { %s1169_s19 = smov 128   ;;  %s1170_s21 = smov 8  }
 0x46c   : > { %993 = dma.vmem_to_hbm [thread:$0]  (%p1251_p4), %s1388_s16, 512, %s1393_s27, %s1395_s20, %s1169_s19, %s1169_s19, %s1170_s21  }
 0x46d PF: > { %p999_p2 = scmp.ge.s32.totalorder %s1161_s29, 2  ;;  %s856_s22 = sand.u32 1, %s1141_s24  }
 0x46e   : > { %s857_s23 = scalar_lea.sflag [#allocation3], %s856_s22 }
 0x46f   : > { %p996_p3 = pnand %p999_p2, %p1258_p8 }
 0x471   : > { %1136 = dma.done.wait (!%p996_p3), %s857_s23, 512  }
 0x472   : > { %1138 = vsyncadd (!%p996_p3), %s857_s23, 4294966784  ;;  %s20_s29 = sadd.s32 1, %s1161_s29   ;;  %s1451_s24 = smov %s1145_s25 }
 0x473   : > { %p17_p5 = scmp.ge.s32.totalorder %s20_s29, 4   ;;  %s1452_s25 = smov %s1149_s26 }
 0x474   : > { %s1453_s26 = smov %s1264_s14  ;;  %s1454_s27 = smov %s1157_s28 }
 0x475   : > { %s1455_s28 = smov %s1457_s9  ;;  %19 = sbr.rel (!%p17_p5) target bundleno = 4 (0x4), region = 83 }
 0x47c   :  { %862 = vsyncpa [#allocation3], 1 }
 0x47d   :  { %864 = vsyncpa [#allocation3 + $0x1], 1 }

</bundles_post_ra>
